<compile_context>
chip_gen: v5e
topology: v5e:2x2
jax: 0.10.0
libtpu: 0.0.40
codegen_flags: <defaults>
</compile_context>

<pallas_src>
import functools

import jax
import jax.numpy as jnp
from jax import lax
from jax.experimental import pallas as pl
from jax.experimental.pallas import tpu as pltpu


def lstm_kernel(x_ref, wih_ref, whh_ref, b_ref, h0_ref, c0_ref,
                out_ref, hn_ref, cn_ref, xw_ref, *, hidden, chunk, seq_len):
    """One grid step = one `chunk` of timesteps.

    x_ref   : (chunk, Dp)  input chunk (bf16)                      VMEM
    wih_ref : (Dp, 4H)     input->gates weights [i,f,o,g] (bf16)   VMEM (resident)
    whh_ref : (H, 4H)      hidden->gates weights [i,f,o,g] (bf16)  VMEM (resident)
    b_ref   : (1, 4H)      b_ih + b_hh, [i,f,o,g] (f32)            VMEM (resident)
    h0_ref  : (1, H)       initial hidden state (f32)              VMEM (resident)
    c0_ref  : (1, H)       initial cell state (f32)                VMEM (resident)
    out_ref : (chunk, H)   per-timestep hidden states (f32)        VMEM out
    hn_ref  : (1, H)       running / final hidden state (f32)      VMEM out (carry)
    cn_ref  : (1, H)       running / final cell state (f32)        VMEM out (carry)
    xw_ref  : (chunk, 4H)  scratch: x @ W_ih^T + b (f32)           VMEM scratch
    """
    pid = pl.program_id(0)

    # hn/cn have a constant block index -> resident across grid steps; they act
    # as the recurrent carry.  Seed them from h0/c0 on the first chunk.
    @pl.when(pid == 0)
    def _():
        hn_ref[...] = h0_ref[...]
        cn_ref[...] = c0_ref[...]

    # One-shot (batched over the chunk) input projection, bias folded in here so
    # the serialized per-timestep path does not pay the (1,4H) add.
    xw_ref[...] = (
        jnp.dot(x_ref[...], wih_ref[...], preferred_element_type=jnp.float32)
        + b_ref[...]
    )

    need_mask = (seq_len % chunk) != 0   # static Python bool
    num_blocks = chunk // 8

    def block_step(blk, carry):
        h, c = carry                              # (1, H) f32 each
        base = pl.multiple_of(blk * 8, 8)
        rows = []
        # 8 timesteps fully unrolled: lets the scheduler overlap step t's
        # EUP/VPU tail (sigmoid/tanh, cell update) with step t+1's W_hh MXU work.
        for j in range(8):
            t = base + j
            gates = xw_ref[pl.ds(t, 1), :] + jnp.dot(
                h.astype(jnp.bfloat16), whh_ref[...],
                preferred_element_type=jnp.float32)
            sig = jax.nn.sigmoid(gates[:, 0:3 * hidden])   # one EUP call: i, f, o
            i_g = sig[:, 0:hidden]
            f_g = sig[:, hidden:2 * hidden]
            o_g = sig[:, 2 * hidden:3 * hidden]
            g_g = jnp.tanh(gates[:, 3 * hidden:4 * hidden])
            c_new = f_g * c + i_g * g_g
            h_new = o_g * jnp.tanh(c_new)
            if need_mask:
                # Sequence zero-padded to a multiple of `chunk`: freeze the state
                # on padded timesteps (scalar 0/1 blend on the VPU, cheap).
                valid = ((pid * chunk + t) < seq_len).astype(jnp.float32)
                h = valid * h_new + (1.0 - valid) * h
                c = valid * c_new + (1.0 - valid) * c
            else:
                h = h_new
                c = c_new
            rows.append(h_new)
        # One dense (8, H) store instead of 8 masked single-row stores.
        out_ref[pl.ds(base, 8), :] = jnp.concatenate(rows, axis=0)
        return (h, c)

    h_fin, c_fin = lax.fori_loop(0, num_blocks, block_step,
                                 (hn_ref[...], cn_ref[...]))
    hn_ref[...] = h_fin
    cn_ref[...] = c_fin


def _permute_gates_ifgo_to_ifog(a, hidden):
    """Reorder last-dim gate blocks from PyTorch [i, f, g, o] to [i, f, o, g]."""
    i = a[..., 0:hidden]
    f = a[..., hidden:2 * hidden]
    g = a[..., 2 * hidden:3 * hidden]
    o = a[..., 3 * hidden:4 * hidden]
    return jnp.concatenate([i, f, o, g], axis=-1)


@functools.partial(jax.jit, static_argnames=("max_chunk",))
def lstm_layer_forward(observations, h0, c0, w_ih, w_hh, b_ih, b_hh,
                       max_chunk=256):
    """Mirrors LSTMLayer.forward:
        obs (S, D) --unsqueeze(0)--> (1, S, D) --LSTM--> (1, S, H) --squeeze(0)--> (S, H)
    Returns (out (S, H), (h_n (1,1,H), c_n (1,1,H))).
    """
    seq, in_dim = observations.shape
    hidden = w_hh.shape[1]

    # --- chunk / padding geometry (static at trace time) ----------------------
    max_chunk = max(8, (max_chunk // 8) * 8)
    chunk = min(max_chunk, ((seq + 7) // 8) * 8)      # multiple of 8
    s_pad = ((seq + chunk - 1) // chunk) * chunk
    num_chunks = s_pad // chunk
    d_pad = ((in_dim + 127) // 128) * 128             # lane-align feature dim

    # --- wrapper-side input / weight prep -------------------------------------
    x = observations.astype(jnp.float32)
    if d_pad != in_dim:
        x = jnp.pad(x, ((0, 0), (0, d_pad - in_dim)))
    if s_pad != seq:
        x = jnp.pad(x, ((0, s_pad - seq), (0, 0)))
    x = x.astype(jnp.bfloat16)

    w_ih_t = w_ih.T                                   # (D, 4H)
    if d_pad != in_dim:
        w_ih_t = jnp.pad(w_ih_t, ((0, d_pad - in_dim), (0, 0)))
    w_hh_t = w_hh.T                                   # (H, 4H)
    bias = (b_ih + b_hh).reshape(1, 4 * hidden)       # (1, 4H)

    w_ih_t = _permute_gates_ifgo_to_ifog(w_ih_t, hidden).astype(jnp.bfloat16)
    w_hh_t = _permute_gates_ifgo_to_ifog(w_hh_t, hidden).astype(jnp.bfloat16)
    bias = _permute_gates_ifgo_to_ifog(bias, hidden).astype(jnp.float32)

    h0_2d = h0.reshape(1, hidden).astype(jnp.float32)
    c0_2d = c0.reshape(1, hidden).astype(jnp.float32)

    kernel = functools.partial(lstm_kernel, hidden=hidden, chunk=chunk,
                               seq_len=seq)

    out, h_n, c_n = pl.pallas_call(
        kernel,
        out_shape=(
            jax.ShapeDtypeStruct((s_pad, hidden), jnp.float32),
            jax.ShapeDtypeStruct((1, hidden), jnp.float32),
            jax.ShapeDtypeStruct((1, hidden), jnp.float32),
        ),
        grid_spec=pltpu.PrefetchScalarGridSpec(
            num_scalar_prefetch=0,
            grid=(num_chunks,),
            in_specs=[
                pl.BlockSpec((chunk, d_pad), lambda i: (i, 0)),       # x chunk
                pl.BlockSpec((d_pad, 4 * hidden), lambda i: (0, 0)),  # W_ih^T
                pl.BlockSpec((hidden, 4 * hidden), lambda i: (0, 0)), # W_hh^T
                pl.BlockSpec((1, 4 * hidden), lambda i: (0, 0)),      # bias
                pl.BlockSpec((1, hidden), lambda i: (0, 0)),          # h0
                pl.BlockSpec((1, hidden), lambda i: (0, 0)),          # c0
            ],
            out_specs=(
                pl.BlockSpec((chunk, hidden), lambda i: (i, 0)),      # out chunk
                pl.BlockSpec((1, hidden), lambda i: (0, 0)),          # h_n (carry)
                pl.BlockSpec((1, hidden), lambda i: (0, 0)),          # c_n (carry)
            ),
            scratch_shapes=[pltpu.VMEM((chunk, 4 * hidden), jnp.float32)],
        ),
        compiler_params=pltpu.CompilerParams(
            dimension_semantics=("arbitrary",),       # recurrence is sequential
            vmem_limit_bytes=48 * 1024 * 1024,
        ),
    )(x, w_ih_t, w_hh_t, bias, h0_2d, c0_2d)

    out = out[:seq]
    return out, (h_n.reshape(1, 1, hidden), c_n.reshape(1, 1, hidden))


def make_params(key, input_dim, hidden_dim):
    """Deterministic parameter init mimicking LSTMLayer.weight_init():
    orthogonal weights (via QR), zero biases. Gate order [i, f, g, o]."""
    k1, k2 = jax.random.split(key)

    def orthogonal(k, shape):
        a = jax.random.normal(k, shape, dtype=jnp.float32)
        rows, cols = shape
        flip = rows < cols
        if flip:
            a = a.T
        q, r = jnp.linalg.qr(a)
        q = q * jnp.sign(jnp.diagonal(r))[None, :]
        if flip:
            q = q.T
        return q

    w_ih = orthogonal(k1, (4 * hidden_dim, input_dim))   # weight_ih_l0
    w_hh = orthogonal(k2, (4 * hidden_dim, hidden_dim))  # weight_hh_l0
    b_ih = jnp.zeros((4 * hidden_dim,), jnp.float32)
    b_hh = jnp.zeros((4 * hidden_dim,), jnp.float32)
    return w_ih, w_hh, b_ih, b_hh


def reference_lstm(observations, h0, c0, w_ih, w_hh, b_ih, b_hh):
    """Pure-JAX f32 reference of the same recurrence (PyTorch gate order)."""
    hidden = w_hh.shape[1]
    h = h0.reshape(1, hidden)
    c = c0.reshape(1, hidden)
    outs = []
    for t in range(observations.shape[0]):
        x_t = observations[t:t + 1]
        gates = x_t @ w_ih.T + h @ w_hh.T + (b_ih + b_hh)[None, :]
        i = jax.nn.sigmoid(gates[:, 0:hidden])
        f = jax.nn.sigmoid(gates[:, hidden:2 * hidden])
        g = jnp.tanh(gates[:, 2 * hidden:3 * hidden])
        o = jax.nn.sigmoid(gates[:, 3 * hidden:4 * hidden])
        c = f * c + i * g
        h = o * jnp.tanh(c)
        outs.append(h)
    return jnp.concatenate(outs, axis=0), h, c


def run_case(key, seq, input_dim, hidden, max_chunk):
    k_obs, k_par = jax.random.split(key)
    observations = jax.random.normal(k_obs, (seq, input_dim), dtype=jnp.float32)
    w_ih, w_hh, b_ih, b_hh = make_params(k_par, input_dim, hidden)

    # get_initial_state(): zeros of shape (1, 1, hidden)
    h0 = jnp.zeros((1, 1, hidden), jnp.float32)
    c0 = jnp.zeros((1, 1, hidden), jnp.float32)

    out, (h_n, c_n) = lstm_layer_forward(observations, h0, c0,
                                         w_ih, w_hh, b_ih, b_hh,
                                         max_chunk=max_chunk)
    jax.block_until_ready((out, h_n, c_n))

    ref_out, ref_h, ref_c = reference_lstm(observations, h0, c0,
                                           w_ih, w_hh, b_ih, b_hh)
    assert out.shape == (seq, hidden)
    assert h_n.shape == (1, 1, hidden) and c_n.shape == (1, 1, hidden)
    # Kernel uses bf16 weights/inputs with f32 accumulation (perf tradeoff),
    # so tolerances vs the f32 reference are loosened.
    assert jnp.allclose(out, ref_out, atol=5e-2, rtol=5e-2)
    assert jnp.allclose(h_n.reshape(1, hidden), ref_h, atol=5e-2, rtol=5e-2)
    assert jnp.allclose(c_n.reshape(1, hidden), ref_c, atol=5e-2, rtol=5e-2)


if __name__ == "__main__":
    key = jax.random.PRNGKey(0)
    k1, k2 = jax.random.split(key)

    # Case 1: lane/sublane-aligned shapes, single chunk (stand-in for D=600, H=1024).
    run_case(k1, seq=8, input_dim=128, hidden=128, max_chunk=256)

    # Case 2: unaligned feature dim, seq not a multiple of the chunk, and
    # multiple grid chunks carrying h/c across iterations.
    run_case(k2, seq=20, input_dim=100, hidden=128, max_chunk=8)

    print("KERNEL_OK")
</pallas_src>

<mosaic_0001>
module attributes {stable_mosaic.version = 11 : i64} {
  func.func @lstm_kernel(%arg0: i32, %arg1: memref<8x128xbf16, #tpu.memory_space<vmem>>, %arg2: memref<128x512xbf16, #tpu.memory_space<vmem>>, %arg3: memref<128x512xbf16, #tpu.memory_space<vmem>>, %arg4: memref<1x512xf32, #tpu.memory_space<vmem>>, %arg5: memref<1x128xf32, #tpu.memory_space<vmem>>, %arg6: memref<1x128xf32, #tpu.memory_space<vmem>>, %arg7: memref<8x128xf32, #tpu.memory_space<vmem>>, %arg8: memref<1x128xf32, #tpu.memory_space<vmem>>, %arg9: memref<1x128xf32, #tpu.memory_space<vmem>>, %arg10: memref<8x512xf32, #tpu.memory_space<vmem>>) attributes {dimension_semantics = [#tpu.dimension_semantics<arbitrary>], iteration_bounds = array<i64: 1>, scalar_prefetch = 0 : i64, scratch_operands = 1 : i64, tpu.core_type = #tpu.core_type<tc>, window_params = [{transform_indices = @transform_0, window_bounds = array<i64: 8, 128>}, {pipeline_mode = #tpu.pipeline_mode<synchronous>, transform_indices = @transform_1, window_bounds = array<i64: 128, 512>}, {pipeline_mode = #tpu.pipeline_mode<synchronous>, transform_indices = @transform_2, window_bounds = array<i64: 128, 512>}, {pipeline_mode = #tpu.pipeline_mode<synchronous>, transform_indices = @transform_3, window_bounds = array<i64: 1, 512>}, {pipeline_mode = #tpu.pipeline_mode<synchronous>, transform_indices = @transform_4, window_bounds = array<i64: 1, 128>}, {pipeline_mode = #tpu.pipeline_mode<synchronous>, transform_indices = @transform_5, window_bounds = array<i64: 1, 128>}, {transform_indices = @transform_6, window_bounds = array<i64: 8, 128>}, {pipeline_mode = #tpu.pipeline_mode<synchronous>, transform_indices = @transform_7, window_bounds = array<i64: 1, 128>}, {pipeline_mode = #tpu.pipeline_mode<synchronous>, transform_indices = @transform_8, window_bounds = array<i64: 1, 128>}]} {
    %c0_i32 = arith.constant 0 : i32
    %0 = arith.cmpi eq, %arg0, %c0_i32 : i32
    %1 = arith.extui %0 : i1 to i32
    %c0_i32_0 = arith.constant 0 : i32
    %2 = arith.cmpi ne, %1, %c0_i32_0 : i32
    scf.if %2 {
      %c0_60 = arith.constant 0 : index
      %c0_61 = arith.constant 0 : index
      %203 = vector.load %arg5[%c0_60, %c0_61] : memref<1x128xf32, #tpu.memory_space<vmem>>, vector<1x128xf32>
      %c0_62 = arith.constant 0 : index
      %c0_63 = arith.constant 0 : index
      %204 = vector.load %arg8[%c0_62, %c0_63] : memref<1x128xf32, #tpu.memory_space<vmem>>, vector<1x128xf32>
      tpu.vector_store %arg8[%c0_62, %c0_63], %203 {strides = array<i32>} : memref<1x128xf32, #tpu.memory_space<vmem>>, vector<1x128xf32>,
      %c0_64 = arith.constant 0 : index
      %c0_65 = arith.constant 0 : index
      %205 = vector.load %arg6[%c0_64, %c0_65] : memref<1x128xf32, #tpu.memory_space<vmem>>, vector<1x128xf32>
      %c0_66 = arith.constant 0 : index
      %c0_67 = arith.constant 0 : index
      %206 = vector.load %arg9[%c0_66, %c0_67] : memref<1x128xf32, #tpu.memory_space<vmem>>, vector<1x128xf32>
      tpu.vector_store %arg9[%c0_66, %c0_67], %205 {strides = array<i32>} : memref<1x128xf32, #tpu.memory_space<vmem>>, vector<1x128xf32>,
    } else {
    }
    %c0 = arith.constant 0 : index
    %c0_1 = arith.constant 0 : index
    %3 = vector.load %arg1[%c0, %c0_1] : memref<8x128xbf16, #tpu.memory_space<vmem>>, vector<8x128xbf16>
    %c0_2 = arith.constant 0 : index
    %c0_3 = arith.constant 0 : index
    %4 = vector.load %arg2[%c0_2, %c0_3] : memref<128x512xbf16, #tpu.memory_space<vmem>>, vector<128x512xbf16>
    %cst = arith.constant dense<0.000000e+00> : vector<8x512xf32>
    %5 = tpu.matmul %3, %4, %cst {dimension_numbers = #tpu.dot_dimension_numbers<[1], [0], [0], [1], [0, 0, 1, 1], [], []>} : vector<8x128xbf16>, vector<128x512xbf16>, vector<8x512xf32> -> vector<8x512xf32>
    %c0_4 = arith.constant 0 : index
    %c0_5 = arith.constant 0 : index
    %6 = vector.load %arg4[%c0_4, %c0_5] : memref<1x512xf32, #tpu.memory_space<vmem>>, vector<1x512xf32>
    %7 = vector.broadcast %6 : vector<1x512xf32> to vector<8x512xf32>
    %8 = arith.addf %5, %7 : vector<8x512xf32>
    %c0_6 = arith.constant 0 : index
    %c0_7 = arith.constant 0 : index
    %9 = vector.load %arg10[%c0_6, %c0_7] : memref<8x512xf32, #tpu.memory_space<vmem>>, vector<8x512xf32>
    tpu.vector_store %arg10[%c0_6, %c0_7], %8 {strides = array<i32>} : memref<8x512xf32, #tpu.memory_space<vmem>>, vector<8x512xf32>,
    %c0_8 = arith.constant 0 : index
    %c0_9 = arith.constant 0 : index
    %10 = vector.load %arg8[%c0_8, %c0_9] : memref<1x128xf32, #tpu.memory_space<vmem>>, vector<1x128xf32>
    %c0_10 = arith.constant 0 : index
    %c0_11 = arith.constant 0 : index
    %11 = vector.load %arg9[%c0_10, %c0_11] : memref<1x128xf32, #tpu.memory_space<vmem>>, vector<1x128xf32>
    %c0_i32_12 = arith.constant 0 : i32
    %c8_i32 = arith.constant 8 : i32
    %12 = arith.muli %c0_i32_12, %c8_i32 : i32
    %13 = tpu.assume_multiple %12, 8 : i32
    %c0_i32_13 = arith.constant 0 : i32
    %14 = arith.addi %13, %c0_i32_13 : i32
    %15 = arith.index_cast %14 : i32 to index
    %c0_14 = arith.constant 0 : index
    %16 = vector.load %arg10[%15, %c0_14] : memref<8x512xf32, #tpu.memory_space<vmem>>, vector<1x512xf32>
    %17 = arith.truncf %10 : vector<1x128xf32> to vector<1x128xbf16>
    %c0_15 = arith.constant 0 : index
    %c0_16 = arith.constant 0 : index
    %18 = vector.load %arg3[%c0_15, %c0_16] : memref<128x512xbf16, #tpu.memory_space<vmem>>, vector<128x512xbf16>
    %cst_17 = arith.constant dense<0.000000e+00> : vector<1x512xf32>
    %19 = tpu.matmul %17, %18, %cst_17 {dimension_numbers = #tpu.dot_dimension_numbers<[1], [0], [0], [1], [0, 0, 1, 1], [], []>} : vector<1x128xbf16>, vector<128x512xbf16>, vector<1x512xf32> -> vector<1x512xf32>
    %20 = arith.addf %16, %19 : vector<1x512xf32>
    %21 = vector.extract_strided_slice %20 {offsets = [0, 0], sizes = [1, 384], strides = [1, 1]} : vector<1x512xf32> to vector<1x384xf32>
    %22 = arith.negf %21 : vector<1x384xf32>
    %23 = math.exp %22 : vector<1x384xf32>
    %cst_18 = arith.constant 1.000000e+00 : f32
    %24 = vector.broadcast %cst_18 : f32 to vector<1x384xf32>
    %25 = arith.addf %24, %23 : vector<1x384xf32>
    %26 = arith.divf %24, %25 : vector<1x384xf32>
    %27 = vector.extract_strided_slice %26 {offsets = [0, 0], sizes = [1, 128], strides = [1, 1]} : vector<1x384xf32> to vector<1x128xf32>
    %28 = vector.extract_strided_slice %26 {offsets = [0, 128], sizes = [1, 128], strides = [1, 1]} : vector<1x384xf32> to vector<1x128xf32>
    %29 = vector.extract_strided_slice %26 {offsets = [0, 256], sizes = [1, 128], strides = [1, 1]} : vector<1x384xf32> to vector<1x128xf32>
    %30 = vector.extract_strided_slice %20 {offsets = [0, 384], sizes = [1, 128], strides = [1, 1]} : vector<1x512xf32> to vector<1x128xf32>
    %31 = math.tanh %30 : vector<1x128xf32>
    %32 = arith.mulf %28, %11 : vector<1x128xf32>
    %33 = arith.mulf %27, %31 : vector<1x128xf32>
    %34 = arith.addf %32, %33 : vector<1x128xf32>
    %35 = math.tanh %34 : vector<1x128xf32>
    %36 = arith.mulf %29, %35 : vector<1x128xf32>
    %c1_i32 = arith.constant 1 : i32
    %37 = arith.addi %13, %c1_i32 : i32
    %38 = arith.index_cast %37 : i32 to index
    %c0_19 = arith.constant 0 : index
    %39 = vector.load %arg10[%38, %c0_19] : memref<8x512xf32, #tpu.memory_space<vmem>>, vector<1x512xf32>
    %40 = arith.truncf %36 : vector<1x128xf32> to vector<1x128xbf16>
    %c0_20 = arith.constant 0 : index
    %c0_21 = arith.constant 0 : index
    %41 = vector.load %arg3[%c0_20, %c0_21] : memref<128x512xbf16, #tpu.memory_space<vmem>>, vector<128x512xbf16>
    %cst_22 = arith.constant dense<0.000000e+00> : vector<1x512xf32>
    %42 = tpu.matmul %40, %41, %cst_22 {dimension_numbers = #tpu.dot_dimension_numbers<[1], [0], [0], [1], [0, 0, 1, 1], [], []>} : vector<1x128xbf16>, vector<128x512xbf16>, vector<1x512xf32> -> vector<1x512xf32>
    %43 = arith.addf %39, %42 : vector<1x512xf32>
    %44 = vector.extract_strided_slice %43 {offsets = [0, 0], sizes = [1, 384], strides = [1, 1]} : vector<1x512xf32> to vector<1x384xf32>
    %45 = arith.negf %44 : vector<1x384xf32>
    %46 = math.exp %45 : vector<1x384xf32>
    %cst_23 = arith.constant 1.000000e+00 : f32
    %47 = vector.broadcast %cst_23 : f32 to vector<1x384xf32>
    %48 = arith.addf %47, %46 : vector<1x384xf32>
    %49 = arith.divf %47, %48 : vector<1x384xf32>
    %50 = vector.extract_strided_slice %49 {offsets = [0, 0], sizes = [1, 128], strides = [1, 1]} : vector<1x384xf32> to vector<1x128xf32>
    %51 = vector.extract_strided_slice %49 {offsets = [0, 128], sizes = [1, 128], strides = [1, 1]} : vector<1x384xf32> to vector<1x128xf32>
    %52 = vector.extract_strided_slice %49 {offsets = [0, 256], sizes = [1, 128], strides = [1, 1]} : vector<1x384xf32> to vector<1x128xf32>
    %53 = vector.extract_strided_slice %43 {offsets = [0, 384], sizes = [1, 128], strides = [1, 1]} : vector<1x512xf32> to vector<1x128xf32>
    %54 = math.tanh %53 : vector<1x128xf32>
    %55 = arith.mulf %51, %34 : vector<1x128xf32>
    %56 = arith.mulf %50, %54 : vector<1x128xf32>
    %57 = arith.addf %55, %56 : vector<1x128xf32>
    %58 = math.tanh %57 : vector<1x128xf32>
    %59 = arith.mulf %52, %58 : vector<1x128xf32>
    %c2_i32 = arith.constant 2 : i32
    %60 = arith.addi %13, %c2_i32 : i32
    %61 = arith.index_cast %60 : i32 to index
    %c0_24 = arith.constant 0 : index
    %62 = vector.load %arg10[%61, %c0_24] : memref<8x512xf32, #tpu.memory_space<vmem>>, vector<1x512xf32>
    %63 = arith.truncf %59 : vector<1x128xf32> to vector<1x128xbf16>
    %c0_25 = arith.constant 0 : index
    %c0_26 = arith.constant 0 : index
    %64 = vector.load %arg3[%c0_25, %c0_26] : memref<128x512xbf16, #tpu.memory_space<vmem>>, vector<128x512xbf16>
    %cst_27 = arith.constant dense<0.000000e+00> : vector<1x512xf32>
    %65 = tpu.matmul %63, %64, %cst_27 {dimension_numbers = #tpu.dot_dimension_numbers<[1], [0], [0], [1], [0, 0, 1, 1], [], []>} : vector<1x128xbf16>, vector<128x512xbf16>, vector<1x512xf32> -> vector<1x512xf32>
    %66 = arith.addf %62, %65 : vector<1x512xf32>
    %67 = vector.extract_strided_slice %66 {offsets = [0, 0], sizes = [1, 384], strides = [1, 1]} : vector<1x512xf32> to vector<1x384xf32>
    %68 = arith.negf %67 : vector<1x384xf32>
    %69 = math.exp %68 : vector<1x384xf32>
    %cst_28 = arith.constant 1.000000e+00 : f32
    %70 = vector.broadcast %cst_28 : f32 to vector<1x384xf32>
    %71 = arith.addf %70, %69 : vector<1x384xf32>
    %72 = arith.divf %70, %71 : vector<1x384xf32>
    %73 = vector.extract_strided_slice %72 {offsets = [0, 0], sizes = [1, 128], strides = [1, 1]} : vector<1x384xf32> to vector<1x128xf32>
    %74 = vector.extract_strided_slice %72 {offsets = [0, 128], sizes = [1, 128], strides = [1, 1]} : vector<1x384xf32> to vector<1x128xf32>
    %75 = vector.extract_strided_slice %72 {offsets = [0, 256], sizes = [1, 128], strides = [1, 1]} : vector<1x384xf32> to vector<1x128xf32>
    %76 = vector.extract_strided_slice %66 {offsets = [0, 384], sizes = [1, 128], strides = [1, 1]} : vector<1x512xf32> to vector<1x128xf32>
    %77 = math.tanh %76 : vector<1x128xf32>
    %78 = arith.mulf %74, %57 : vector<1x128xf32>
    %79 = arith.mulf %73, %77 : vector<1x128xf32>
    %80 = arith.addf %78, %79 : vector<1x128xf32>
    %81 = math.tanh %80 : vector<1x128xf32>
    %82 = arith.mulf %75, %81 : vector<1x128xf32>
    %c3_i32 = arith.constant 3 : i32
    %83 = arith.addi %13, %c3_i32 : i32
    %84 = arith.index_cast %83 : i32 to index
    %c0_29 = arith.constant 0 : index
    %85 = vector.load %arg10[%84, %c0_29] : memref<8x512xf32, #tpu.memory_space<vmem>>, vector<1x512xf32>
    %86 = arith.truncf %82 : vector<1x128xf32> to vector<1x128xbf16>
    %c0_30 = arith.constant 0 : index
    %c0_31 = arith.constant 0 : index
    %87 = vector.load %arg3[%c0_30, %c0_31] : memref<128x512xbf16, #tpu.memory_space<vmem>>, vector<128x512xbf16>
    %cst_32 = arith.constant dense<0.000000e+00> : vector<1x512xf32>
    %88 = tpu.matmul %86, %87, %cst_32 {dimension_numbers = #tpu.dot_dimension_numbers<[1], [0], [0], [1], [0, 0, 1, 1], [], []>} : vector<1x128xbf16>, vector<128x512xbf16>, vector<1x512xf32> -> vector<1x512xf32>
    %89 = arith.addf %85, %88 : vector<1x512xf32>
    %90 = vector.extract_strided_slice %89 {offsets = [0, 0], sizes = [1, 384], strides = [1, 1]} : vector<1x512xf32> to vector<1x384xf32>
    %91 = arith.negf %90 : vector<1x384xf32>
    %92 = math.exp %91 : vector<1x384xf32>
    %cst_33 = arith.constant 1.000000e+00 : f32
    %93 = vector.broadcast %cst_33 : f32 to vector<1x384xf32>
    %94 = arith.addf %93, %92 : vector<1x384xf32>
    %95 = arith.divf %93, %94 : vector<1x384xf32>
    %96 = vector.extract_strided_slice %95 {offsets = [0, 0], sizes = [1, 128], strides = [1, 1]} : vector<1x384xf32> to vector<1x128xf32>
    %97 = vector.extract_strided_slice %95 {offsets = [0, 128], sizes = [1, 128], strides = [1, 1]} : vector<1x384xf32> to vector<1x128xf32>
    %98 = vector.extract_strided_slice %95 {offsets = [0, 256], sizes = [1, 128], strides = [1, 1]} : vector<1x384xf32> to vector<1x128xf32>
    %99 = vector.extract_strided_slice %89 {offsets = [0, 384], sizes = [1, 128], strides = [1, 1]} : vector<1x512xf32> to vector<1x128xf32>
    %100 = math.tanh %99 : vector<1x128xf32>
    %101 = arith.mulf %97, %80 : vector<1x128xf32>
    %102 = arith.mulf %96, %100 : vector<1x128xf32>
    %103 = arith.addf %101, %102 : vector<1x128xf32>
    %104 = math.tanh %103 : vector<1x128xf32>
    %105 = arith.mulf %98, %104 : vector<1x128xf32>
    %c4_i32 = arith.constant 4 : i32
    %106 = arith.addi %13, %c4_i32 : i32
    %107 = arith.index_cast %106 : i32 to index
    %c0_34 = arith.constant 0 : index
    %108 = vector.load %arg10[%107, %c0_34] : memref<8x512xf32, #tpu.memory_space<vmem>>, vector<1x512xf32>
    %109 = arith.truncf %105 : vector<1x128xf32> to vector<1x128xbf16>
    %c0_35 = arith.constant 0 : index
    %c0_36 = arith.constant 0 : index
    %110 = vector.load %arg3[%c0_35, %c0_36] : memref<128x512xbf16, #tpu.memory_space<vmem>>, vector<128x512xbf16>
    %cst_37 = arith.constant dense<0.000000e+00> : vector<1x512xf32>
    %111 = tpu.matmul %109, %110, %cst_37 {dimension_numbers = #tpu.dot_dimension_numbers<[1], [0], [0], [1], [0, 0, 1, 1], [], []>} : vector<1x128xbf16>, vector<128x512xbf16>, vector<1x512xf32> -> vector<1x512xf32>
    %112 = arith.addf %108, %111 : vector<1x512xf32>
    %113 = vector.extract_strided_slice %112 {offsets = [0, 0], sizes = [1, 384], strides = [1, 1]} : vector<1x512xf32> to vector<1x384xf32>
    %114 = arith.negf %113 : vector<1x384xf32>
    %115 = math.exp %114 : vector<1x384xf32>
    %cst_38 = arith.constant 1.000000e+00 : f32
    %116 = vector.broadcast %cst_38 : f32 to vector<1x384xf32>
    %117 = arith.addf %116, %115 : vector<1x384xf32>
    %118 = arith.divf %116, %117 : vector<1x384xf32>
    %119 = vector.extract_strided_slice %118 {offsets = [0, 0], sizes = [1, 128], strides = [1, 1]} : vector<1x384xf32> to vector<1x128xf32>
    %120 = vector.extract_strided_slice %118 {offsets = [0, 128], sizes = [1, 128], strides = [1, 1]} : vector<1x384xf32> to vector<1x128xf32>
    %121 = vector.extract_strided_slice %118 {offsets = [0, 256], sizes = [1, 128], strides = [1, 1]} : vector<1x384xf32> to vector<1x128xf32>
    %122 = vector.extract_strided_slice %112 {offsets = [0, 384], sizes = [1, 128], strides = [1, 1]} : vector<1x512xf32> to vector<1x128xf32>
    %123 = math.tanh %122 : vector<1x128xf32>
    %124 = arith.mulf %120, %103 : vector<1x128xf32>
    %125 = arith.mulf %119, %123 : vector<1x128xf32>
    %126 = arith.addf %124, %125 : vector<1x128xf32>
    %127 = math.tanh %126 : vector<1x128xf32>
    %128 = arith.mulf %121, %127 : vector<1x128xf32>
    %c5_i32 = arith.constant 5 : i32
    %129 = arith.addi %13, %c5_i32 : i32
    %130 = arith.index_cast %129 : i32 to index
    %c0_39 = arith.constant 0 : index
    %131 = vector.load %arg10[%130, %c0_39] : memref<8x512xf32, #tpu.memory_space<vmem>>, vector<1x512xf32>
    %132 = arith.truncf %128 : vector<1x128xf32> to vector<1x128xbf16>
    %c0_40 = arith.constant 0 : index
    %c0_41 = arith.constant 0 : index
    %133 = vector.load %arg3[%c0_40, %c0_41] : memref<128x512xbf16, #tpu.memory_space<vmem>>, vector<128x512xbf16>
    %cst_42 = arith.constant dense<0.000000e+00> : vector<1x512xf32>
    %134 = tpu.matmul %132, %133, %cst_42 {dimension_numbers = #tpu.dot_dimension_numbers<[1], [0], [0], [1], [0, 0, 1, 1], [], []>} : vector<1x128xbf16>, vector<128x512xbf16>, vector<1x512xf32> -> vector<1x512xf32>
    %135 = arith.addf %131, %134 : vector<1x512xf32>
    %136 = vector.extract_strided_slice %135 {offsets = [0, 0], sizes = [1, 384], strides = [1, 1]} : vector<1x512xf32> to vector<1x384xf32>
    %137 = arith.negf %136 : vector<1x384xf32>
    %138 = math.exp %137 : vector<1x384xf32>
    %cst_43 = arith.constant 1.000000e+00 : f32
    %139 = vector.broadcast %cst_43 : f32 to vector<1x384xf32>
    %140 = arith.addf %139, %138 : vector<1x384xf32>
    %141 = arith.divf %139, %140 : vector<1x384xf32>
    %142 = vector.extract_strided_slice %141 {offsets = [0, 0], sizes = [1, 128], strides = [1, 1]} : vector<1x384xf32> to vector<1x128xf32>
    %143 = vector.extract_strided_slice %141 {offsets = [0, 128], sizes = [1, 128], strides = [1, 1]} : vector<1x384xf32> to vector<1x128xf32>
    %144 = vector.extract_strided_slice %141 {offsets = [0, 256], sizes = [1, 128], strides = [1, 1]} : vector<1x384xf32> to vector<1x128xf32>
    %145 = vector.extract_strided_slice %135 {offsets = [0, 384], sizes = [1, 128], strides = [1, 1]} : vector<1x512xf32> to vector<1x128xf32>
    %146 = math.tanh %145 : vector<1x128xf32>
    %147 = arith.mulf %143, %126 : vector<1x128xf32>
    %148 = arith.mulf %142, %146 : vector<1x128xf32>
    %149 = arith.addf %147, %148 : vector<1x128xf32>
    %150 = math.tanh %149 : vector<1x128xf32>
    %151 = arith.mulf %144, %150 : vector<1x128xf32>
    %c6_i32 = arith.constant 6 : i32
    %152 = arith.addi %13, %c6_i32 : i32
    %153 = arith.index_cast %152 : i32 to index
    %c0_44 = arith.constant 0 : index
    %154 = vector.load %arg10[%153, %c0_44] : memref<8x512xf32, #tpu.memory_space<vmem>>, vector<1x512xf32>
    %155 = arith.truncf %151 : vector<1x128xf32> to vector<1x128xbf16>
    %c0_45 = arith.constant 0 : index
    %c0_46 = arith.constant 0 : index
    %156 = vector.load %arg3[%c0_45, %c0_46] : memref<128x512xbf16, #tpu.memory_space<vmem>>, vector<128x512xbf16>
    %cst_47 = arith.constant dense<0.000000e+00> : vector<1x512xf32>
    %157 = tpu.matmul %155, %156, %cst_47 {dimension_numbers = #tpu.dot_dimension_numbers<[1], [0], [0], [1], [0, 0, 1, 1], [], []>} : vector<1x128xbf16>, vector<128x512xbf16>, vector<1x512xf32> -> vector<1x512xf32>
    %158 = arith.addf %154, %157 : vector<1x512xf32>
    %159 = vector.extract_strided_slice %158 {offsets = [0, 0], sizes = [1, 384], strides = [1, 1]} : vector<1x512xf32> to vector<1x384xf32>
    %160 = arith.negf %159 : vector<1x384xf32>
    %161 = math.exp %160 : vector<1x384xf32>
    %cst_48 = arith.constant 1.000000e+00 : f32
    %162 = vector.broadcast %cst_48 : f32 to vector<1x384xf32>
    %163 = arith.addf %162, %161 : vector<1x384xf32>
    %164 = arith.divf %162, %163 : vector<1x384xf32>
    %165 = vector.extract_strided_slice %164 {offsets = [0, 0], sizes = [1, 128], strides = [1, 1]} : vector<1x384xf32> to vector<1x128xf32>
    %166 = vector.extract_strided_slice %164 {offsets = [0, 128], sizes = [1, 128], strides = [1, 1]} : vector<1x384xf32> to vector<1x128xf32>
    %167 = vector.extract_strided_slice %164 {offsets = [0, 256], sizes = [1, 128], strides = [1, 1]} : vector<1x384xf32> to vector<1x128xf32>
    %168 = vector.extract_strided_slice %158 {offsets = [0, 384], sizes = [1, 128], strides = [1, 1]} : vector<1x512xf32> to vector<1x128xf32>
    %169 = math.tanh %168 : vector<1x128xf32>
    %170 = arith.mulf %166, %149 : vector<1x128xf32>
    %171 = arith.mulf %165, %169 : vector<1x128xf32>
    %172 = arith.addf %170, %171 : vector<1x128xf32>
    %173 = math.tanh %172 : vector<1x128xf32>
    %174 = arith.mulf %167, %173 : vector<1x128xf32>
    %c7_i32 = arith.constant 7 : i32
    %175 = arith.addi %13, %c7_i32 : i32
    %176 = arith.index_cast %175 : i32 to index
    %c0_49 = arith.constant 0 : index
    %177 = vector.load %arg10[%176, %c0_49] : memref<8x512xf32, #tpu.memory_space<vmem>>, vector<1x512xf32>
    %178 = arith.truncf %174 : vector<1x128xf32> to vector<1x128xbf16>
    %c0_50 = arith.constant 0 : index
    %c0_51 = arith.constant 0 : index
    %179 = vector.load %arg3[%c0_50, %c0_51] : memref<128x512xbf16, #tpu.memory_space<vmem>>, vector<128x512xbf16>
    %cst_52 = arith.constant dense<0.000000e+00> : vector<1x512xf32>
    %180 = tpu.matmul %178, %179, %cst_52 {dimension_numbers = #tpu.dot_dimension_numbers<[1], [0], [0], [1], [0, 0, 1, 1], [], []>} : vector<1x128xbf16>, vector<128x512xbf16>, vector<1x512xf32> -> vector<1x512xf32>
    %181 = arith.addf %177, %180 : vector<1x512xf32>
    %182 = vector.extract_strided_slice %181 {offsets = [0, 0], sizes = [1, 384], strides = [1, 1]} : vector<1x512xf32> to vector<1x384xf32>
    %183 = arith.negf %182 : vector<1x384xf32>
    %184 = math.exp %183 : vector<1x384xf32>
    %cst_53 = arith.constant 1.000000e+00 : f32
    %185 = vector.broadcast %cst_53 : f32 to vector<1x384xf32>
    %186 = arith.addf %185, %184 : vector<1x384xf32>
    %187 = arith.divf %185, %186 : vector<1x384xf32>
    %188 = vector.extract_strided_slice %187 {offsets = [0, 0], sizes = [1, 128], strides = [1, 1]} : vector<1x384xf32> to vector<1x128xf32>
    %189 = vector.extract_strided_slice %187 {offsets = [0, 128], sizes = [1, 128], strides = [1, 1]} : vector<1x384xf32> to vector<1x128xf32>
    %190 = vector.extract_strided_slice %187 {offsets = [0, 256], sizes = [1, 128], strides = [1, 1]} : vector<1x384xf32> to vector<1x128xf32>
    %191 = vector.extract_strided_slice %181 {offsets = [0, 384], sizes = [1, 128], strides = [1, 1]} : vector<1x512xf32> to vector<1x128xf32>
    %192 = math.tanh %191 : vector<1x128xf32>
    %193 = arith.mulf %189, %172 : vector<1x128xf32>
    %194 = arith.mulf %188, %192 : vector<1x128xf32>
    %195 = arith.addf %193, %194 : vector<1x128xf32>
    %196 = math.tanh %195 : vector<1x128xf32>
    %197 = arith.mulf %190, %196 : vector<1x128xf32>
    %198 = tpu.concatenate %36, %59, %82, %105, %128, %151, %174, %197 in 0 : vector<1x128xf32>, vector<1x128xf32>, vector<1x128xf32>, vector<1x128xf32>, vector<1x128xf32>, vector<1x128xf32>, vector<1x128xf32>, vector<1x128xf32> -> vector<8x128xf32>
    %199 = arith.index_cast %13 : i32 to index
    %c0_54 = arith.constant 0 : index
    %200 = vector.load %arg7[%199, %c0_54] : memref<8x128xf32, #tpu.memory_space<vmem>>, vector<8x128xf32>
    tpu.vector_store %arg7[%199, %c0_54], %198 {strides = array<i32>} : memref<8x128xf32, #tpu.memory_space<vmem>>, vector<8x128xf32>,
    %c1_i32_55 = arith.constant 1 : i32
    %c0_56 = arith.constant 0 : index
    %c0_57 = arith.constant 0 : index
    %201 = vector.load %arg8[%c0_56, %c0_57] : memref<1x128xf32, #tpu.memory_space<vmem>>, vector<1x128xf32>
    tpu.vector_store %arg8[%c0_56, %c0_57], %197 {strides = array<i32>} : memref<1x128xf32, #tpu.memory_space<vmem>>, vector<1x128xf32>,
    %c0_58 = arith.constant 0 : index
    %c0_59 = arith.constant 0 : index
    %202 = vector.load %arg9[%c0_58, %c0_59] : memref<1x128xf32, #tpu.memory_space<vmem>>, vector<1x128xf32>
    tpu.vector_store %arg9[%c0_58, %c0_59], %195 {strides = array<i32>} : memref<1x128xf32, #tpu.memory_space<vmem>>, vector<1x128xf32>,
    return
  }
  func.func @transform_0(%arg0: i32) -> (i32, i32) {
    %c0_i32 = arith.constant 0 : i32
    %c0_i32_0 = arith.constant 0 : i32
    return %arg0, %c0_i32 : i32, i32
  }
  func.func @transform_1(%arg0: i32) -> (i32, i32) {
    %c0_i32 = arith.constant 0 : i32
    %c0_i32_0 = arith.constant 0 : i32
    %c0_i32_1 = arith.constant 0 : i32
    return %c0_i32, %c0_i32_0 : i32, i32
  }
  func.func @transform_2(%arg0: i32) -> (i32, i32) {
    %c0_i32 = arith.constant 0 : i32
    %c0_i32_0 = arith.constant 0 : i32
    %c0_i32_1 = arith.constant 0 : i32
    return %c0_i32, %c0_i32_0 : i32, i32
  }
  func.func @transform_3(%arg0: i32) -> (i32, i32) {
    %c0_i32 = arith.constant 0 : i32
    %c0_i32_0 = arith.constant 0 : i32
    %c0_i32_1 = arith.constant 0 : i32
    return %c0_i32, %c0_i32_0 : i32, i32
  }
  func.func @transform_4(%arg0: i32) -> (i32, i32) {
    %c0_i32 = arith.constant 0 : i32
    %c0_i32_0 = arith.constant 0 : i32
    %c0_i32_1 = arith.constant 0 : i32
    return %c0_i32, %c0_i32_0 : i32, i32
  }
  func.func @transform_5(%arg0: i32) -> (i32, i32) {
    %c0_i32 = arith.constant 0 : i32
    %c0_i32_0 = arith.constant 0 : i32
    %c0_i32_1 = arith.constant 0 : i32
    return %c0_i32, %c0_i32_0 : i32, i32
  }
  func.func @transform_6(%arg0: i32) -> (i32, i32) {
    %c0_i32 = arith.constant 0 : i32
    %c0_i32_0 = arith.constant 0 : i32
    return %arg0, %c0_i32 : i32, i32
  }
  func.func @transform_7(%arg0: i32) -> (i32, i32) {
    %c0_i32 = arith.constant 0 : i32
    %c0_i32_0 = arith.constant 0 : i32
    %c0_i32_1 = arith.constant 0 : i32
    return %c0_i32, %c0_i32_0 : i32, i32
  }
  func.func @transform_8(%arg0: i32) -> (i32, i32) {
    %c0_i32 = arith.constant 0 : i32
    %c0_i32_0 = arith.constant 0 : i32
    %c0_i32_1 = arith.constant 0 : i32
    return %c0_i32, %c0_i32_0 : i32, i32
  }
}

</mosaic_0001>

<bundles_post_ra>
// kernel: lstm_layer_forward.1
= control target key start
LH: loop header
LB: loop body
LE: loop exit
PB: predicated region body
PF: predicated region fallthrough
CT: control target
= control target key end

     0   :  { %14 = vsyncpa [#allocation4], 0  ;;  %s2766_s0 = inlined_call_operand.vmem [shape: bf16[8,128], index: 0, kind: input, shape index: {}]   ;;  %s2767_s1 = inlined_call_operand.vmem [shape: bf16[128,512], index: 1, kind: input, shape index: {}]   ;;  %s2768_s2 = inlined_call_operand.vmem [shape: bf16[128,512], index: 2, kind: input, shape index: {}]   ;;  %s2769_s3 = inlined_call_operand.vmem [shape: f32[1,512], index: 3, kind: input, shape index: {}]   ;;  %s2770_s4 = inlined_call_operand.vmem [shape: f32[1,128], index: 4, kind: input, shape index: {}]   ;;  %s2771_s5 = inlined_call_operand.vmem [shape: f32[1,128], index: 5, kind: input, shape index: {}]   ;;  %s2772_s6 = inlined_call_operand.hbm [shape: f32[8,128], index: 6, kind: output, shape index: {0}]   ;;  %s2773_s7 = inlined_call_operand.hbm [shape: f32[1,128], index: 7, kind: output, shape index: {1}]   ;;  %s2774_s8 = inlined_call_operand.hbm [shape: f32[1,128], index: 8, kind: output, shape index: {2}]  }
   0x1   :  { %v1568_v0 = vld [vmem:[%s2767_s1 + $0xe0] sm:$0xf]  ;;  %v1748_v1 = vld [vmem:[%s2767_s1 + $0xec] sm:$0xf0]  ;;  %v1746_v2 = vld [vmem:[%s2767_s1 + $0xe4] sm:$0xf] }
   0x2   :  { %v1569_v3 = vor.u32 %v1748_v1, %v1568_v0  ;;  %v1570_v4 = vld [vmem:[%s2767_s1 + $0xf0] sm:$0xf0]  ;;  %v1576_v5 = vld [vmem:[%s2767_s1 + $0xe8] sm:$0xf]  ;;  %v1749_v6 = vld [vmem:[%s2767_s1 + $0xf4] sm:$0xf0] }
   0x3   :  { %v1573_v7 = vor.u32 %v1746_v2, %v1570_v4  ;;  %v1577_v8 = vor.u32 %v1749_v6, %v1576_v5  ;;  %v1747_v9 = vld [vmem:[%s2767_s1 + $0xec] sm:$0xf]  ;;  %v1578_v10 = vld [vmem:[%s2767_s1 + $0xf8] sm:$0xf0]  ;;  %v1552_v11 = vld [vmem:[%s2767_s1 + $0xc0] sm:$0xf] }
   0x4   :  { %239 = vmatpush.bf16.msra.mxu0 %v1569_v3  ;;  %v1581_v12 = vor.u32 %v1747_v9, %v1578_v10  ;;  %v1744_v13 = vld [vmem:[%s2767_s1 + $0xcc] sm:$0xf0]  ;;  %v1742_v14 = vld [vmem:[%s2767_s1 + $0xc4] sm:$0xf]  ;;  %v1554_v15 = vld [vmem:[%s2767_s1 + $0xd0] sm:$0xf0] }
   0x5   :  { %252 = vmatpush.bf16.msra.mxu1 %v1573_v7  ;;  %265 = vmatpush.bf16.msra.mxu2 %v1577_v8  ;;  %v1553_v16 = vor.u32 %v1744_v13, %v1552_v11  ;;  %v1557_v17 = vor.u32 %v1742_v14, %v1554_v15  ;;  %v1560_v18 = vld [vmem:[%s2767_s1 + $0xc8] sm:$0xf]  ;;  %v1745_v19 = vld [vmem:[%s2767_s1 + $0xd4] sm:$0xf0]  ;;  %v1743_v20 = vld [vmem:[%s2767_s1 + $0xcc] sm:$0xf] }
   0x6   :  { %278 = vmatpush.bf16.msra.mxu3 %v1581_v12  ;;  %v1561_v21 = vor.u32 %v1745_v19, %v1560_v18  ;;  %v1562_v22 = vld [vmem:[%s2767_s1 + $0xd8] sm:$0xf0]  ;;  %v1536_v23 = vld [vmem:[%s2767_s1 + $0xa0] sm:$0xf]  ;;  %v1740_v24 = vld [vmem:[%s2767_s1 + $0xac] sm:$0xf0] }
   0x7   :  { %v1565_v25 = vor.u32 %v1743_v20, %v1562_v22  ;;  %v1738_v26 = vld [vmem:[%s2767_s1 + $0xa4] sm:$0xf]  ;;  %v1538_v27 = vld [vmem:[%s2767_s1 + $0xb0] sm:$0xf0]  ;;  %v1544_v28 = vld [vmem:[%s2767_s1 + $0xa8] sm:$0xf]  ;;  %v1537_v29 = vor.u32 %v1740_v24, %v1536_v23 }
   0x8   :  { %240 = vmatpush.bf16.msra.mxu0 %v1553_v16  ;;  %v1741_v30 = vld [vmem:[%s2767_s1 + $0xb4] sm:$0xf0]  ;;  %v1739_v31 = vld [vmem:[%s2767_s1 + $0xac] sm:$0xf]  ;;  %v1546_v32 = vld [vmem:[%s2767_s1 + $0xb8] sm:$0xf0]  ;;  %v1541_v33 = vor.u32 %v1738_v26, %v1538_v27 }
   0x9   :  { %253 = vmatpush.bf16.msra.mxu1 %v1557_v17  ;;  %266 = vmatpush.bf16.msra.mxu2 %v1561_v21  ;;  %v1545_v34 = vor.u32 %v1741_v30, %v1544_v28  ;;  %v1520_v35 = vld [vmem:[%s2767_s1 + $0x80] sm:$0xf]  ;;  %v1736_v36 = vld [vmem:[%s2767_s1 + $0x8c] sm:$0xf0]  ;;  %v1734_v37 = vld [vmem:[%s2767_s1 + $0x84] sm:$0xf]  ;;  %v1549_v38 = vor.u32 %v1739_v31, %v1546_v32 }
   0xa   :  { %279 = vmatpush.bf16.msra.mxu3 %v1565_v25  ;;  %v1522_v39 = vld [vmem:[%s2767_s1 + $0x90] sm:$0xf0]  ;;  %v1528_v40 = vld [vmem:[%s2767_s1 + $0x88] sm:$0xf]  ;;  %v1737_v41 = vld [vmem:[%s2767_s1 + $0x94] sm:$0xf0]  ;;  %v1521_v44 = vor.u32 %v1736_v36, %v1520_v35 }
   0xb   :  { %v1735_v42 = vld [vmem:[%s2767_s1 + $0x8c] sm:$0xf]  ;;  %v1530_v43 = vld [vmem:[%s2767_s1 + $0x98] sm:$0xf0]  ;;  %v1525_v45 = vor.u32 %v1734_v37, %v1522_v39  ;;  %v1529_v46 = vor.u32 %v1737_v41, %v1528_v40  ;;  %v1504_v47 = vld [vmem:[%s2767_s1 + $0x60] sm:$0xf] }
   0xc   :  { %241 = vmatpush.bf16.msra.mxu0 %v1537_v29  ;;  %v1732_v48 = vld [vmem:[%s2767_s1 + $0x6c] sm:$0xf0]  ;;  %v1730_v49 = vld [vmem:[%s2767_s1 + $0x64] sm:$0xf]  ;;  %v1533_v50 = vor.u32 %v1735_v42, %v1530_v43  ;;  %v1506_v51 = vld [vmem:[%s2767_s1 + $0x70] sm:$0xf0] }
   0xd   :  { %254 = vmatpush.bf16.msra.mxu1 %v1541_v33  ;;  %267 = vmatpush.bf16.msra.mxu2 %v1545_v34  ;;  %v1512_v52 = vld [vmem:[%s2767_s1 + $0x68] sm:$0xf]  ;;  %v1733_v53 = vld [vmem:[%s2767_s1 + $0x74] sm:$0xf0]  ;;  %v1731_v54 = vld [vmem:[%s2767_s1 + $0x6c] sm:$0xf]  ;;  %v1505_v56 = vor.u32 %v1732_v48, %v1504_v47  ;;  %v1509_v57 = vor.u32 %v1730_v49, %v1506_v51 }
   0xe   :  { %280 = vmatpush.bf16.msra.mxu3 %v1549_v38  ;;  %v1514_v55 = vld [vmem:[%s2767_s1 + $0x78] sm:$0xf0]  ;;  %v1513_v58 = vor.u32 %v1733_v53, %v1512_v52  ;;  %v1488_v59 = vld [vmem:[%s2767_s1 + $0x40] sm:$0xf]  ;;  %v1728_v60 = vld [vmem:[%s2767_s1 + $0x4c] sm:$0xf0] }
   0xf   :  { %v1726_v61 = vld [vmem:[%s2767_s1 + $0x44] sm:$0xf]  ;;  %v1517_v62 = vor.u32 %v1731_v54, %v1514_v55  ;;  %v1490_v63 = vld [vmem:[%s2767_s1 + $0x50] sm:$0xf0]  ;;  %v1496_v0 = vld [vmem:[%s2767_s1 + $0x48] sm:$0xf]  ;;  %v1489_v4 = vor.u32 %v1728_v60, %v1488_v59 }
  0x10   :  { %242 = vmatpush.bf16.msra.mxu0 %v1521_v44  ;;  %v1729_v1 = vld [vmem:[%s2767_s1 + $0x54] sm:$0xf0]  ;;  %v1727_v2 = vld [vmem:[%s2767_s1 + $0x4c] sm:$0xf]  ;;  %v1498_v3 = vld [vmem:[%s2767_s1 + $0x58] sm:$0xf0]  ;;  %v1493_v5 = vor.u32 %v1726_v61, %v1490_v63 }
  0x11   :  { %255 = vmatpush.bf16.msra.mxu1 %v1525_v45  ;;  %268 = vmatpush.bf16.msra.mxu2 %v1529_v46  ;;  %v1497_v6 = vor.u32 %v1729_v1, %v1496_v0  ;;  %v1472_v7 = vld [vmem:[%s2767_s1 + $0x20] sm:$0xf]  ;;  %v1724_v8 = vld [vmem:[%s2767_s1 + $0x2c] sm:$0xf0]  ;;  %v1722_v9 = vld [vmem:[%s2767_s1 + $0x24] sm:$0xf]  ;;  %v1501_v10 = vor.u32 %v1727_v2, %v1498_v3 }
  0x12   :  { %281 = vmatpush.bf16.msra.mxu3 %v1533_v50  ;;  %v1474_v11 = vld [vmem:[%s2767_s1 + $0x30] sm:$0xf0]  ;;  %v1480_v12 = vld [vmem:[%s2767_s1 + $0x28] sm:$0xf]  ;;  %v1725_v13 = vld [vmem:[%s2767_s1 + $0x34] sm:$0xf0]  ;;  %v1473_v16 = vor.u32 %v1724_v8, %v1472_v7 }
  0x13   :  { %v1723_v14 = vld [vmem:[%s2767_s1 + $0x2c] sm:$0xf]  ;;  %v1482_v15 = vld [vmem:[%s2767_s1 + $0x38] sm:$0xf0]  ;;  %v1456_v17 = vld [vmem:[%s2767_s1] sm:$0xf]  ;;  %v1477_v19 = vor.u32 %v1722_v9, %v1474_v11  ;;  %v1481_v20 = vor.u32 %v1725_v13, %v1480_v12 }
  0x14   :  { %243 = vmatpush.bf16.msra.mxu0 %v1505_v56  ;;  %v1720_v18 = vld [vmem:[%s2767_s1 + $0xc] sm:$0xf0]  ;;  %v1718_v21 = vld [vmem:[%s2767_s1 + $0x4] sm:$0xf]  ;;  %v1458_v22 = vld [vmem:[%s2767_s1 + $0x10] sm:$0xf0]  ;;  %v1485_v24 = vor.u32 %v1723_v14, %v1482_v15 }
  0x15   :  { %256 = vmatpush.bf16.msra.mxu1 %v1509_v57  ;;  %269 = vmatpush.bf16.msra.mxu2 %v1513_v58  ;;  %v1464_v23 = vld [vmem:[%s2767_s1 + $0x8] sm:$0xf]  ;;  %v1721_v25 = vld [vmem:[%s2767_s1 + $0x14] sm:$0xf0]  ;;  %v1719_v26 = vld [vmem:[%s2767_s1 + $0xc] sm:$0xf]  ;;  %v1457_v31 = vor.u32 %v1720_v18, %v1456_v17  ;;  %v1461_v35 = vor.u32 %v1718_v21, %v1458_v22 }
  0x16   :  { %282 = vmatpush.bf16.msra.mxu3 %v1517_v62  ;;  %v1466_v27 = vld [vmem:[%s2767_s1 + $0x18] sm:$0xf0]  ;;  %v1696_v28 = vld [vmem:[%s2768_s2 + $0xe0] sm:$0xf]  ;;  %v1780_v29 = vld [vmem:[%s2768_s2 + $0xec] sm:$0xf0]  ;;  %v1465_v36 = vor.u32 %v1721_v25, %v1464_v23 }
  0x17   :  { %v1778_v30 = vld [vmem:[%s2768_s2 + $0xe4] sm:$0xf]  ;;  %v1698_v32 = vld [vmem:[%s2768_s2 + $0xf0] sm:$0xf0]  ;;  %v1704_v33 = vld [vmem:[%s2768_s2 + $0xe8] sm:$0xf]  ;;  %v1469_v39 = vor.u32 %v1719_v26, %v1466_v27  ;;  %v2189_v40 = vor.u32 %v1780_v29, %v1696_v28 }
  0x18   :  { %244 = vmatpush.bf16.msra.mxu0 %v1489_v4  ;;  %v1781_v34 = vld [vmem:[%s2768_s2 + $0xf4] sm:$0xf0]  ;;  %v1779_v37 = vld [vmem:[%s2768_s2 + $0xec] sm:$0xf]  ;;  %v1706_v38 = vld [vmem:[%s2768_s2 + $0xf8] sm:$0xf0]  ;;  %v2191_v41 = vor.u32 %v1778_v30, %v1698_v32 }
  0x19   :  { %257 = vmatpush.bf16.msra.mxu1 %v1493_v5  ;;  %270 = vmatpush.bf16.msra.mxu2 %v1497_v6  ;;  %v2193_v42 = vor.u32 %v1781_v34, %v1704_v33  ;;  %v1680_v43 = vld [vmem:[%s2768_s2 + $0xc0] sm:$0xf]  ;;  %v1776_v44 = vld [vmem:[%s2768_s2 + $0xcc] sm:$0xf0]  ;;  %v1774_v45 = vld [vmem:[%s2768_s2 + $0xc4] sm:$0xf]  ;;  %v2204_v46 = vor.u32 %v1779_v37, %v1706_v38 }
  0x1a   :  { %283 = vmatpush.bf16.msra.mxu3 %v1501_v10  ;;  %v1682_v47 = vld [vmem:[%s2768_s2 + $0xd0] sm:$0xf0]  ;;  %v1688_v48 = vld [vmem:[%s2768_s2 + $0xc8] sm:$0xf]  ;;  %v1777_v49 = vld [vmem:[%s2768_s2 + $0xd4] sm:$0xf0]  ;;  %v2225_v53 = vor.u32 %v1776_v44, %v1680_v43 }
  0x1b   :  { %v1775_v50 = vld [vmem:[%s2768_s2 + $0xcc] sm:$0xf]  ;;  %v1690_v51 = vld [vmem:[%s2768_s2 + $0xd8] sm:$0xf0]  ;;  %v36_v52 = vld [vmem:[%s2766_s0] sm:$0xf]  ;;  %v2229_v54 = vor.u32 %v1774_v45, %v1682_v47  ;;  %v2231_v55 = vor.u32 %v1777_v49, %v1688_v48 }
  0x1c   :  { %245 = vmatpush.bf16.msra.mxu0 %v1473_v16  ;;  %v1664_v56 = vld [vmem:[%s2768_s2 + $0xa0] sm:$0xf]  ;;  %v1772_v57 = vld [vmem:[%s2768_s2 + $0xac] sm:$0xf0]  ;;  %v1770_v58 = vld [vmem:[%s2768_s2 + $0xa4] sm:$0xf]  ;;  %v2243_v59 = vor.u32 %v1775_v50, %v1690_v51 }
  0x1d   :  { %258 = vmatpush.bf16.msra.mxu1 %v1477_v19  ;;  %271 = vmatpush.bf16.msra.mxu2 %v1481_v20  ;;  %v1666_v60 = vld [vmem:[%s2768_s2 + $0xb0] sm:$0xf0]  ;;  %v1672_v61 = vld [vmem:[%s2768_s2 + $0xa8] sm:$0xf]  ;;  %v1773_v62 = vld [vmem:[%s2768_s2 + $0xb4] sm:$0xf0]  ;;  %v2261_v1 = vor.u32 %v1772_v57, %v1664_v56 }
  0x1e   :  { %284 = vmatpush.bf16.msra.mxu3 %v1485_v24  ;;  %v1771_v63 = vld [vmem:[%s2768_s2 + $0xac] sm:$0xf]  ;;  %v1674_v0 = vld [vmem:[%s2768_s2 + $0xb8] sm:$0xf0]  ;;  %v2265_v2 = vor.u32 %v1770_v58, %v1666_v60  ;;  %v2267_v3 = vor.u32 %v1773_v62, %v1672_v61  ;;  %v1648_v4 = vld [vmem:[%s2768_s2 + $0x80] sm:$0xf] }
  0x1f   :  { %v1768_v5 = vld [vmem:[%s2768_s2 + $0x8c] sm:$0xf0]  ;;  %v1766_v6 = vld [vmem:[%s2768_s2 + $0x84] sm:$0xf]  ;;  %v2279_v7 = vor.u32 %v1771_v63, %v1674_v0  ;;  %v1650_v8 = vld [vmem:[%s2768_s2 + $0x90] sm:$0xf0] }
  0x20   :  { %246 = vmatpush.bf16.msra.mxu0 %v1457_v31  ;;  %v1656_v9 = vld [vmem:[%s2768_s2 + $0x88] sm:$0xf]  ;;  %v1769_v10 = vld [vmem:[%s2768_s2 + $0x94] sm:$0xf0]  ;;  %v1767_v11 = vld [vmem:[%s2768_s2 + $0x8c] sm:$0xf]  ;;  %v2297_v13 = vor.u32 %v1768_v5, %v1648_v4  ;;  %v2307_v16 = vor.u32 %v1766_v6, %v1650_v8 }
  0x21   :  { %259 = vmatpush.bf16.msra.mxu1 %v1461_v35  ;;  %272 = vmatpush.bf16.msra.mxu2 %v1465_v36  ;;  %v1658_v12 = vld [vmem:[%s2768_s2 + $0x98] sm:$0xf0]  ;;  %v1632_v14 = vld [vmem:[%s2768_s2 + $0x60] sm:$0xf]  ;;  %v1764_v15 = vld [vmem:[%s2768_s2 + $0x6c] sm:$0xf0]  ;;  %v2309_v17 = vor.u32 %v1769_v10, %v1656_v9 }
  0x22   :  { %285 = vmatpush.bf16.msra.mxu3 %v1469_v39  ;;  %v1762_v18 = vld [vmem:[%s2768_s2 + $0x64] sm:$0xf]  ;;  %v1634_v19 = vld [vmem:[%s2768_s2 + $0x70] sm:$0xf0]  ;;  %v1640_v20 = vld [vmem:[%s2768_s2 + $0x68] sm:$0xf]  ;;  %v2321_v21 = vor.u32 %v1767_v11, %v1658_v12 }
  0x23   :  { %247 = vmatmul.bf16.vlgmr.msra.gmra.mxu0 %v36_v52  ;;  %v1765_v22 = vld [vmem:[%s2768_s2 + $0x74] sm:$0xf0]  ;;  %v32_v23 = vld [vmem:[%s2770_s4] sm:$0x1] }
  0x24   :  { %494 = vmatpush.bf16.msrb.mxu0 %v2189_v40  ;;  %273 = vmatmul.bf16.vlgmr.msra.gmra.mxu2 %v36_v52 }
  0x25   :  { %507 = vmatpush.bf16.msrb.mxu1 %v2191_v41  ;;  %520 = vmatpush.bf16.msrb.mxu2 %v2193_v42 }
  0x26   :  { %533 = vmatpush.bf16.msrb.mxu3 %v2204_v46  ;;  %260 = vmatmul.bf16.vlgmr.msra.gmra.mxu1 %v36_v52 }
  0x27   :  { %286 = vmatmul.bf16.vlgmr.msra.gmra.mxu3 %v36_v52 }
  0x28   :  { %495 = vmatpush.bf16.msrb.mxu0 %v2225_v53 }
  0x29   :  { %508 = vmatpush.bf16.msrb.mxu1 %v2229_v54  ;;  %521 = vmatpush.bf16.msrb.mxu2 %v2231_v55 }
  0x2a   :  { %534 = vmatpush.bf16.msrb.mxu3 %v2243_v59 }
  0x2c   :  { %496 = vmatpush.bf16.msrb.mxu0 %v2261_v1 }
  0x2d   :  { %509 = vmatpush.bf16.msrb.mxu1 %v2265_v2  ;;  %522 = vmatpush.bf16.msrb.mxu2 %v2267_v3 }
  0x2e   :  { %535 = vmatpush.bf16.msrb.mxu3 %v2279_v7 }
  0x2f   :  { %15 = vsyncpa [#allocation6], 0  ;;  %v1763_v24 = vld [vmem:[%s2768_s2 + $0x6c] sm:$0xf]  ;;  %v1642_v25 = vld [vmem:[%s2768_s2 + $0x78] sm:$0xf0]  ;;  %v2336_v26 = vor.u32 %v1764_v15, %v1632_v14  ;;  %v2340_v27 = vor.u32 %v1762_v18, %v1634_v19  ;;  %v2342_v28 = vor.u32 %v1765_v22, %v1640_v20 }
  0x30   :  { %33 = vst [vmem:[#allocation5] sm:$0x1] %v32_v23  ;;  %497 = vmatpush.bf16.msrb.mxu0 %v2297_v13  ;;  %v1616_v29 = vld [vmem:[%s2768_s2 + $0x40] sm:$0xf]  ;;  %v1760_v30 = vld [vmem:[%s2768_s2 + $0x4c] sm:$0xf0]  ;;  %v2354_v32 = vor.u32 %v1763_v24, %v1642_v25 }
  0x31   :  { %510 = vmatpush.bf16.msrb.mxu1 %v2307_v16  ;;  %523 = vmatpush.bf16.msrb.mxu2 %v2309_v17  ;;  %v1758_v31 = vld [vmem:[%s2768_s2 + $0x44] sm:$0xf]  ;;  %v1618_v33 = vld [vmem:[%s2768_s2 + $0x50] sm:$0xf0]  ;;  %v1624_v34 = vld [vmem:[%s2768_s2 + $0x48] sm:$0xf]  ;;  %v2372_v38 = vor.u32 %v1760_v30, %v1616_v29 }
  0x32   :  { %536 = vmatpush.bf16.msrb.mxu3 %v2321_v21  ;;  %v1761_v35 = vld [vmem:[%s2768_s2 + $0x54] sm:$0xf0]  ;;  %v1759_v36 = vld [vmem:[%s2768_s2 + $0x4c] sm:$0xf]  ;;  %v1626_v37 = vld [vmem:[%s2768_s2 + $0x58] sm:$0xf0]  ;;  %v2376_v39 = vor.u32 %v1758_v31, %v1618_v33 }
  0x33   :  { %v2378_v43 = vor.u32 %v1761_v35, %v1624_v34  ;;  %v1600_v44 = vld [vmem:[%s2768_s2 + $0x20] sm:$0xf]  ;;  %v1756_v45 = vld [vmem:[%s2768_s2 + $0x2c] sm:$0xf0]  ;;  %v1754_v47 = vld [vmem:[%s2768_s2 + $0x24] sm:$0xf]  ;;  %v2390_v48 = vor.u32 %v1759_v36, %v1626_v37 }
  0x34   :  { %498 = vmatpush.bf16.msrb.mxu0 %v2336_v26  ;;  %v1602_v49 = vld [vmem:[%s2768_s2 + $0x30] sm:$0xf0]  ;;  %v1608_v50 = vld [vmem:[%s2768_s2 + $0x28] sm:$0xf]  ;;  %v1757_v51 = vld [vmem:[%s2768_s2 + $0x34] sm:$0xf0]  ;;  %v2408_v57 = vor.u32 %v1756_v45, %v1600_v44 }
  0x35   :  { %511 = vmatpush.bf16.msrb.mxu1 %v2340_v27  ;;  %524 = vmatpush.bf16.msrb.mxu2 %v2342_v28  ;;  %v1755_v52 = vld [vmem:[%s2768_s2 + $0x2c] sm:$0xf]  ;;  %v1610_v56 = vld [vmem:[%s2768_s2 + $0x38] sm:$0xf0]  ;;  %v2412_v58 = vor.u32 %v1754_v47, %v1602_v49  ;;  %v2414_v60 = vor.u32 %v1757_v51, %v1608_v50  ;;  %v1584_v61 = vld [vmem:[%s2768_s2] sm:$0xf] }
  0x36   :  { %537 = vmatpush.bf16.msrb.mxu3 %v2354_v32  ;;  %v1752_v62 = vld [vmem:[%s2768_s2 + $0xc] sm:$0xf0]  ;;  %v1750_v63 = vld [vmem:[%s2768_s2 + $0x4] sm:$0xf]  ;;  %v2426_v0 = vor.u32 %v1755_v52, %v1610_v56  ;;  %v1586_v4 = vld [vmem:[%s2768_s2 + $0x10] sm:$0xf0] }
  0x37   :  { %v1592_v5 = vld [vmem:[%s2768_s2 + $0x8] sm:$0xf]  ;;  %v1753_v6 = vld [vmem:[%s2768_s2 + $0x14] sm:$0xf0]  ;;  %v1751_v8 = vld [vmem:[%s2768_s2 + $0xc] sm:$0xf]  ;;  %v2444_v10 = vor.u32 %v1752_v62, %v1584_v61  ;;  %v2448_v12 = vor.u32 %v1750_v63, %v1586_v4 }
  0x38   :  { %499 = vmatpush.bf16.msrb.mxu0 %v2372_v38  ;;  %v1594_v9 = vld [vmem:[%s2768_s2 + $0x18] sm:$0xf0]  ;;  %v295_v11 = vld [vmem:[#allocation5] sm:$0x1]  ;;  %v2450_v14 = vor.u32 %v1753_v6, %v1592_v5  ;;  %v69_v19 = vld [vmem:[%s2769_s3] sm:$0xf] }
  0x39   :  { %512 = vmatpush.bf16.msrb.mxu1 %v2376_v39  ;;  %525 = vmatpush.bf16.msrb.mxu2 %v2378_v43  ;;  %v2453_v15 = vor.u32 %v1751_v8, %v1594_v9  ;;  %v301_v18 = vpack.c.bf16 %v295_v11, %v295_v11  ;;  %v72_v20 = vperm.slane %v69_v19, 1  ;;  %v71_v23 = vperm.slane %v69_v19, 0  ;;  %v34_v49 = vld [vmem:[%s2771_s5] sm:$0x1]  ;;  %s1925_s5 = smov [#allocation5]   ;;  %s1404_s0 = sshll.u32 %s2773_s7, 4  ;;  %s1405_s0 = int_to_ptr.hbm [resolvable:$true] %s1404_s0 }
  0x3a   :  { %538 = vmatpush.bf16.msrb.mxu3 %v2390_v48  ;;  %v73_v25 = vperm.slane %v69_v19, 2  ;;  %v74_v29 = vperm.slane %v69_v19, 3  ;;  %35 = vst [vmem:[#allocation7] sm:$0x1] %v34_v49  ;;  %vm553_vm0 = vcmask 1040384   ;;  %vm555_vm1 = vcmask 1042434  }
  0x3b   :  { %vm557_vm2 = vcmask 1041408   ;;  %s1402_s4 = sshll.u32 %s1925_s5, 4  ;;  %s1926_s15 = smov [#allocation7]   ;;  %s1403_s4 = int_to_ptr.vmem [resolvable:$true] %s1402_s4 }
  0x3c   :  { %500 = vmatpush.bf16.msrb.mxu0 %v2408_v57  ;;  %s1413_s16 = sshll.u32 %s1926_s15, 4  ;;  %s1415_s19 = sshll.u32 %s2774_s8, 4  ;;  %s1414_s16 = int_to_ptr.vmem [resolvable:$true] %s1413_s16  ;;  %s1416_s19 = int_to_ptr.hbm [resolvable:$true] %s1415_s19 }
  0x3d   :  { %513 = vmatpush.bf16.msrb.mxu1 %v2412_v58  ;;  %526 = vmatpush.bf16.msrb.mxu2 %v2414_v60  ;;  %s1927_s20 = smov [#allocation3]   ;;  %s1393_s24 = sshll.u32 %s2772_s6, 4  ;;  %s1394_s24 = int_to_ptr.hbm [resolvable:$true] %s1393_s24 }
  0x3e   :  { %539 = vmatpush.bf16.msrb.mxu3 %v2426_v0  ;;  %s1391_s21 = sshll.u32 %s1927_s20, 4  ;;  %s1392_s21 = int_to_ptr.vmem [resolvable:$true] %s1391_s21 }
  0x40   :  { %501 = vmatpush.bf16.msrb.mxu0 %v2444_v10 }
  0x41   :  { %514 = vmatpush.bf16.msrb.mxu1 %v2448_v12  ;;  %527 = vmatpush.bf16.msrb.mxu2 %v2450_v14 }
  0x42   :  { %540 = vmatpush.bf16.msrb.mxu3 %v2453_v15 }
  0x43   :  { %502 = vmatmul.bf16.vlgmr.msrb.gmra.mxu0 %v301_v18 }
  0x44   :  { %605 = vmatpush.bf16.msra.mxu0 %v2189_v40  ;;  %515 = vmatmul.bf16.vlgmr.msrb.gmra.mxu1 %v301_v18 }
  0x45   :  { %618 = vmatpush.bf16.msra.mxu1 %v2191_v41  ;;  %528 = vmatmul.bf16.vlgmr.msrb.gmra.mxu2 %v301_v18 }
  0x46   :  { %541 = vmatmul.bf16.vlgmr.msrb.gmra.mxu3 %v301_v18  ;;  %631 = vmatpush.bf16.msra.mxu2 %v2193_v42 }
  0x47   :  { %644 = vmatpush.bf16.msra.mxu3 %v2204_v46 }
  0x48   :  { %606 = vmatpush.bf16.msra.mxu0 %v2225_v53 }
  0x49   :  { %619 = vmatpush.bf16.msra.mxu1 %v2229_v54 }
  0x4a   :  { %632 = vmatpush.bf16.msra.mxu2 %v2231_v55 }
  0x4b   :  { %645 = vmatpush.bf16.msra.mxu3 %v2243_v59 }
  0x4c   :  { %607 = vmatpush.bf16.msra.mxu0 %v2261_v1 }
  0x4d   :  { %620 = vmatpush.bf16.msra.mxu1 %v2265_v2 }
  0x4e   :  { %633 = vmatpush.bf16.msra.mxu2 %v2267_v3 }
  0x4f   :  { %646 = vmatpush.bf16.msra.mxu3 %v2279_v7 }
  0x50   :  { %608 = vmatpush.bf16.msra.mxu0 %v2297_v13 }
  0x51   :  { %621 = vmatpush.bf16.msra.mxu1 %v2307_v16 }
  0x52   :  { %634 = vmatpush.bf16.msra.mxu2 %v2309_v17 }
  0x53   :  { %647 = vmatpush.bf16.msra.mxu3 %v2321_v21 }
  0x54   :  { %609 = vmatpush.bf16.msra.mxu0 %v2336_v26 }
  0x55   :  { %622 = vmatpush.bf16.msra.mxu1 %v2340_v27 }
  0x56   :  { %635 = vmatpush.bf16.msra.mxu2 %v2342_v28 }
  0x57   :  { %648 = vmatpush.bf16.msra.mxu3 %v2354_v32 }
  0x58   :  { %610 = vmatpush.bf16.msra.mxu0 %v2372_v38 }
  0x59   :  { %623 = vmatpush.bf16.msra.mxu1 %v2376_v39 }
  0x5a   :  { %636 = vmatpush.bf16.msra.mxu2 %v2378_v43 }
  0x5b   :  { %649 = vmatpush.bf16.msra.mxu3 %v2390_v48 }
  0x5c   :  { %611 = vmatpush.bf16.msra.mxu0 %v2408_v57 }
  0x5d   :  { %624 = vmatpush.bf16.msra.mxu1 %v2412_v58 }
  0x5e   :  { %637 = vmatpush.bf16.msra.mxu2 %v2414_v60 }
  0x5f   :  { %650 = vmatpush.bf16.msra.mxu3 %v2426_v0 }
  0x60   :  { %612 = vmatpush.bf16.msra.mxu0 %v2444_v10 }
  0x61   :  { %625 = vmatpush.bf16.msra.mxu1 %v2448_v12 }
  0x62   :  { %638 = vmatpush.bf16.msra.mxu2 %v2450_v14 }
  0x63   :  { %651 = vmatpush.bf16.msra.mxu3 %v2453_v15 }
  0x64   :  { %713 = vmatpush.bf16.msrb.mxu0 %v2189_v40 }
  0x65   :  { %726 = vmatpush.bf16.msrb.mxu1 %v2191_v41 }
  0x66   :  { %739 = vmatpush.bf16.msrb.mxu2 %v2193_v42 }
  0x67   :  { %752 = vmatpush.bf16.msrb.mxu3 %v2204_v46 }
  0x68   :  { %714 = vmatpush.bf16.msrb.mxu0 %v2225_v53 }
  0x69   :  { %727 = vmatpush.bf16.msrb.mxu1 %v2229_v54 }
  0x6a   :  { %740 = vmatpush.bf16.msrb.mxu2 %v2231_v55 }
  0x6b   :  { %753 = vmatpush.bf16.msrb.mxu3 %v2243_v59 }
  0x6c   :  { %715 = vmatpush.bf16.msrb.mxu0 %v2261_v1 }
  0x6d   :  { %728 = vmatpush.bf16.msrb.mxu1 %v2265_v2 }
  0x6e   :  { %741 = vmatpush.bf16.msrb.mxu2 %v2267_v3 }
  0x6f   :  { %754 = vmatpush.bf16.msrb.mxu3 %v2279_v7 }
  0x70   :  { %716 = vmatpush.bf16.msrb.mxu0 %v2297_v13 }
  0x71   :  { %729 = vmatpush.bf16.msrb.mxu1 %v2307_v16 }
  0x72   :  { %742 = vmatpush.bf16.msrb.mxu2 %v2309_v17 }
  0x73   :  { %755 = vmatpush.bf16.msrb.mxu3 %v2321_v21 }
  0x74   :  { %717 = vmatpush.bf16.msrb.mxu0 %v2336_v26 }
  0x75   :  { %730 = vmatpush.bf16.msrb.mxu1 %v2340_v27 }
  0x76   :  { %743 = vmatpush.bf16.msrb.mxu2 %v2342_v28 }
  0x77   :  { %756 = vmatpush.bf16.msrb.mxu3 %v2354_v32 }
  0x78   :  { %718 = vmatpush.bf16.msrb.mxu0 %v2372_v38 }
  0x79   :  { %731 = vmatpush.bf16.msrb.mxu1 %v2376_v39 }
  0x7a   :  { %744 = vmatpush.bf16.msrb.mxu2 %v2378_v43 }
  0x7b   :  { %757 = vmatpush.bf16.msrb.mxu3 %v2390_v48 }
  0x7c   :  { %719 = vmatpush.bf16.msrb.mxu0 %v2408_v57 }
  0x7d   :  { %732 = vmatpush.bf16.msrb.mxu1 %v2412_v58 }
  0x7e   :  { %745 = vmatpush.bf16.msrb.mxu2 %v2414_v60 }
  0x7f   :  { %758 = vmatpush.bf16.msrb.mxu3 %v2426_v0 }
  0x80   :  { %720 = vmatpush.bf16.msrb.mxu0 %v2444_v10 }
  0x81   :  { %733 = vmatpush.bf16.msrb.mxu1 %v2448_v12 }
  0x82   :  { %746 = vmatpush.bf16.msrb.mxu2 %v2450_v14 }
  0x83   :  { %759 = vmatpush.bf16.msrb.mxu3 %v2453_v15 }
  0xa0   :  { %v248_v30 = vpop.f32.mrf.mxu0 }
  0xa1   :  { %v249_v31 = vadd.f32 %v248_v30, %v71_v23 }
  0xa3   :  { %v261_v22 = vpop.f32.mrf.mxu1  ;;  %291 = vst [vmem:[#allocation2] sm:$0xff] %v249_v31 }
  0xa4   :  { %v262_v24 = vadd.f32 %v261_v22, %v72_v20 }
  0xa6   :  { %292 = vst [vmem:[#allocation2 + $0x8] sm:$0xff] %v262_v24 }
  0xa7   :  { %v274_v33 = vpop.f32.mrf.mxu2 }
  0xa8   :  { %v275_v34 = vadd.f32 %v274_v33, %v73_v25  ;;  %v250_v44 = vpop.f32.mrf.mxu0 }
  0xaa   :  { %v287_v35 = vpop.f32.mrf.mxu3  ;;  %293 = vst [vmem:[#allocation2 + $0x10] sm:$0xff] %v275_v34 }
  0xab   :  { %v288_v36 = vadd.f32 %v287_v35, %v74_v29  ;;  %v263_v37 = vpop.f32.mrf.mxu1 }
  0xad   :  { %294 = vst [vmem:[#allocation2 + $0x18] sm:$0xff] %v288_v36 }
  0xaf   :  { %v276_v45 = vpop.f32.mrf.mxu2 }
  0xb0   :  { %v296_v45 = vld [vmem:[#allocation7] sm:$0x1] }
  0xb2   :  { %v289_v47 = vpop.f32.mrf.mxu3 }
  0xb4   :  { %v300_v9 = vld [vmem:[#allocation2] ss:$8 sm:$0xf] }
  0xc0   :  { %v503_v50 = vpop.f32.mrf.mxu0 }
  0xc1   :  { %v516_v51 = vpop.f32.mrf.mxu1 }
  0xc2   :  { %v550_v52 = vrot.slane %v516_v51, 7 }
  0xc4   :  { %v554_v4 = vsel %vm553_vm0, %v503_v50, %v550_v52 }
  0xc8   :  { %v529_v56 = vpop.f32.mrf.mxu2  ;;  %v505_v63 = vpop.f32.mrf.mxu0 }
  0xc9   :  { %v551_v61 = vrot.slane %v529_v56, 6  ;;  %v542_v62 = vpop.f32.mrf.mxu3  ;;  %v518_v6 = vpop.f32.mrf.mxu1 }
  0xca   :  { %v552_v5 = vrot.slane %v542_v62, 5 }
  0xcc   :  { %v556_v8 = vsel %vm555_vm1, %v551_v61, %v552_v5 }
  0xcd   :  { %v558_v11 = vsel %vm557_vm2, %v554_v4, %v556_v8 }
  0xce   :  { %v560_v18 = vadd.f32 %v558_v11, %v300_v9 }
  0xd0   :  { %v1710_v19 = vmul.f32 -1.442695, %v560_v18  ;;  %v531_v20 = vpop.f32.mrf.mxu2  ;;  %v581_v30 = vrot.slane %v560_v18, 3 }
  0xd1   :  { %v544_v22 = vpop.f32.mrf.mxu3 }
  0xd2   :  { %1785 = vpow2.f32 %v1710_v19 }
  0xd8   :  { %v1786_v23 = vpop.eup %1785 }
  0xd9   :  { %v564_v24 = vadd.f32 1.0, %v1786_v23 }
  0xdb   :  { %1787 = vrcp.f32 %v564_v24  ;;  %v576_v33 = vand.u32 2147483648, %v564_v24  ;;  %v574_v35 = vand.u32 2147483647, %v564_v24  ;;  %vm570_vm4 = vweird.f32 %v564_v24 }
  0xdc   :  { %1789 = vtanh.f32 %v581_v30 }
  0xdd   :  { %v577_v37 = vor.u32 1.1754944e-38, %v576_v33  ;;  %vm575_vm6 = vcmp.eq.f32.partialorder %v574_v35, 8.507059e+37 }
  0xe1   :  { %v1788_v25 = vpop.eup %1787 }
  0xe2   :  { %v566_v29 = vmul.f32 %v1788_v25, %v564_v24  ;;  %vm571_vm3 = vweird.f32 %v1788_v25  ;;  %v1790_v50 = vpop.eup %1789 }
  0xe3   :  { %vm572_vm5 = vmor %vm570_vm4, %vm571_vm3 }
  0xe4   :  { %v567_v31 = vsub.f32 1.0, %v566_v29 }
  0xe6   :  { %v568_v34 = vmul.f32 %v1788_v25, %v567_v31 }
  0xe8   :  { %v569_v36 = vadd.f32 %v1788_v25, %v568_v34 }
  0xea   :  { %v573_v44 = vsel %vm572_vm5, %v1788_v25, %v569_v36  ;;  %v603_v25 = vld [vmem:[#allocation2 + $0x1] ss:$8 sm:$0xf] }
  0xeb   :  { %v578_v47 = vsel %vm575_vm6, %v577_v37, %v573_v44  ;;  %vm1373_vm6 = vcmask 1042432  }
  0xec   :  { %v585_v49 = vrot.slane %v578_v47, 1  ;;  %v588_v52 = vmul.f32 %v1790_v50, %v578_v47  ;;  %v591_v61 = vrot.slane %v578_v47, 2 }
  0xee   :  { %v587_v51 = vmul.f32 %v585_v49, %v296_v45 }
  0xf0   :  { %v2532_v56 = vadd.f32 %v588_v52, %v587_v51 }
  0xf2   :  { %1791 = vtanh.f32 %v2532_v56 }
  0xf8   :  { %v1792_v62 = vpop.eup %1791 }
  0xf9   :  { %v2535_v63 = vmul.f32 %v1792_v62, %v591_v61 }
  0xfb   :  { %v604_v4 = vpack.c.bf16 %v2535_v63, %v2535_v63 }
  0xfd   :  { %613 = vmatmul.bf16.vlgmr.msra.gmra.mxu0 %v604_v4  ;;  %626 = vmatmul.bf16.vlgmr.msra.gmra.mxu1 %v604_v4 }
  0xfe   :  { %639 = vmatmul.bf16.vlgmr.msra.gmra.mxu2 %v604_v4  ;;  %652 = vmatmul.bf16.vlgmr.msra.gmra.mxu3 %v604_v4 }
  0xff   :  { %821 = vmatpush.bf16.msra.mxu0 %v2189_v40  ;;  %834 = vmatpush.bf16.msra.mxu1 %v2191_v41 }
 0x100   :  { %847 = vmatpush.bf16.msra.mxu2 %v2193_v42  ;;  %860 = vmatpush.bf16.msra.mxu3 %v2204_v46 }
 0x103   :  { %822 = vmatpush.bf16.msra.mxu0 %v2225_v53  ;;  %835 = vmatpush.bf16.msra.mxu1 %v2229_v54 }
 0x104   :  { %848 = vmatpush.bf16.msra.mxu2 %v2231_v55  ;;  %861 = vmatpush.bf16.msra.mxu3 %v2243_v59 }
 0x107   :  { %823 = vmatpush.bf16.msra.mxu0 %v2261_v1  ;;  %836 = vmatpush.bf16.msra.mxu1 %v2265_v2 }
 0x108   :  { %849 = vmatpush.bf16.msra.mxu2 %v2267_v3  ;;  %862 = vmatpush.bf16.msra.mxu3 %v2279_v7 }
 0x10b   :  { %824 = vmatpush.bf16.msra.mxu0 %v2297_v13  ;;  %837 = vmatpush.bf16.msra.mxu1 %v2307_v16 }
 0x10c   :  { %850 = vmatpush.bf16.msra.mxu2 %v2309_v17  ;;  %863 = vmatpush.bf16.msra.mxu3 %v2321_v21 }
 0x10f   :  { %825 = vmatpush.bf16.msra.mxu0 %v2336_v26  ;;  %838 = vmatpush.bf16.msra.mxu1 %v2340_v27 }
 0x110   :  { %851 = vmatpush.bf16.msra.mxu2 %v2342_v28  ;;  %864 = vmatpush.bf16.msra.mxu3 %v2354_v32 }
 0x113   :  { %826 = vmatpush.bf16.msra.mxu0 %v2372_v38  ;;  %839 = vmatpush.bf16.msra.mxu1 %v2376_v39 }
 0x114   :  { %852 = vmatpush.bf16.msra.mxu2 %v2378_v43  ;;  %865 = vmatpush.bf16.msra.mxu3 %v2390_v48 }
 0x117   :  { %827 = vmatpush.bf16.msra.mxu0 %v2408_v57  ;;  %840 = vmatpush.bf16.msra.mxu1 %v2412_v58 }
 0x118   :  { %853 = vmatpush.bf16.msra.mxu2 %v2414_v60  ;;  %866 = vmatpush.bf16.msra.mxu3 %v2426_v0 }
 0x11b   :  { %828 = vmatpush.bf16.msra.mxu0 %v2444_v10  ;;  %841 = vmatpush.bf16.msra.mxu1 %v2448_v12 }
 0x11c   :  { %854 = vmatpush.bf16.msra.mxu2 %v2450_v14  ;;  %867 = vmatpush.bf16.msra.mxu3 %v2453_v15 }
 0x17a   :  { %v614_v5 = vpop.f32.mrf.mxu0  ;;  %v627_v6 = vpop.f32.mrf.mxu1 }
 0x17b   :  { %v661_v8 = vrot.slane %v627_v6, 7 }
 0x17d   :  { %v664_v23 = vsel %vm553_vm0, %v614_v5, %v661_v8 }
 0x181   :  { %v640_v9 = vpop.f32.mrf.mxu2  ;;  %v653_v11 = vpop.f32.mrf.mxu3 }
 0x182   :  { %v662_v18 = vrot.slane %v640_v9, 6  ;;  %v663_v19 = vrot.slane %v653_v11, 5  ;;  %v616_v20 = vpop.f32.mrf.mxu0  ;;  %v629_v22 = vpop.f32.mrf.mxu1 }
 0x184   :  { %v665_v24 = vsel %vm555_vm1, %v662_v18, %v663_v19 }
 0x185   :  { %v666_v29 = vsel %vm557_vm2, %v664_v23, %v665_v24 }
 0x186   :  { %v668_v30 = vadd.f32 %v666_v29, %v603_v25 }
 0x188   :  { %v1711_v31 = vmul.f32 -1.442695, %v668_v30  ;;  %v689_v45 = vrot.slane %v668_v30, 3 }
 0x189   :  { %v642_v33 = vpop.f32.mrf.mxu2  ;;  %v655_v34 = vpop.f32.mrf.mxu3 }
 0x18a   :  { %1793 = vpow2.f32 %v1711_v31 }
 0x190   :  { %v1794_v35 = vpop.eup %1793 }
 0x191   :  { %v672_v36 = vadd.f32 1.0, %v1794_v35 }
 0x193   :  { %1795 = vrcp.f32 %v672_v36  ;;  %v684_v49 = vand.u32 2147483648, %v672_v36  ;;  %v682_v51 = vand.u32 2147483647, %v672_v36  ;;  %vm678_vm8 = vweird.f32 %v672_v36 }
 0x194   :  { %1797 = vtanh.f32 %v689_v45 }
 0x195   :  { %v685_v61 = vor.u32 1.1754944e-38, %v684_v49  ;;  %vm683_vm10 = vcmp.eq.f32.partialorder %v682_v51, 8.507059e+37 }
 0x199   :  { %v1796_v37 = vpop.eup %1795 }
 0x19a   :  { %v674_v44 = vmul.f32 %v1796_v37, %v672_v36  ;;  %vm679_vm7 = vweird.f32 %v1796_v37  ;;  %v1798_v6 = vpop.eup %1797 }
 0x19b   :  { %vm680_vm9 = vmor %vm678_vm8, %vm679_vm7 }
 0x19c   :  { %v675_v47 = vsub.f32 1.0, %v674_v44 }
 0x19e   :  { %v676_v50 = vmul.f32 %v1796_v37, %v675_v47 }
 0x1a0   :  { %v677_v52 = vadd.f32 %v1796_v37, %v676_v50 }
 0x1a2   :  { %v681_v62 = vsel %vm680_vm9, %v1796_v37, %v677_v52  ;;  %v711_v37 = vld [vmem:[#allocation2 + $0x2] ss:$8 sm:$0xf] }
 0x1a3   :  { %v686_v4 = vsel %vm683_vm10, %v685_v61, %v681_v62 }
 0x1a4   :  { %v693_v5 = vrot.slane %v686_v4, 1  ;;  %v696_v9 = vmul.f32 %v1798_v6, %v686_v4  ;;  %v699_v18 = vrot.slane %v686_v4, 2 }
 0x1a6   :  { %v695_v8 = vmul.f32 %v693_v5, %v2532_v56 }
 0x1a8   :  { %v2575_v11 = vadd.f32 %v696_v9, %v695_v8 }
 0x1aa   :  { %1799 = vtanh.f32 %v2575_v11 }
 0x1b0   :  { %v1800_v19 = vpop.eup %1799 }
 0x1b1   :  { %v2578_v20 = vmul.f32 %v1800_v19, %v699_v18 }
 0x1b3   :  { %v712_v22 = vpack.c.bf16 %v2578_v20, %v2578_v20 }
 0x1b5   :  { %721 = vmatmul.bf16.vlgmr.msrb.gmra.mxu0 %v712_v22  ;;  %734 = vmatmul.bf16.vlgmr.msrb.gmra.mxu1 %v712_v22 }
 0x1b6   :  { %747 = vmatmul.bf16.vlgmr.msrb.gmra.mxu2 %v712_v22  ;;  %760 = vmatmul.bf16.vlgmr.msrb.gmra.mxu3 %v712_v22 }
 0x1b7   :  { %929 = vmatpush.bf16.msrb.mxu0 %v2189_v40  ;;  %942 = vmatpush.bf16.msrb.mxu1 %v2191_v41 }
 0x1b8   :  { %955 = vmatpush.bf16.msrb.mxu2 %v2193_v42  ;;  %968 = vmatpush.bf16.msrb.mxu3 %v2204_v46 }
 0x1bb   :  { %930 = vmatpush.bf16.msrb.mxu0 %v2225_v53  ;;  %943 = vmatpush.bf16.msrb.mxu1 %v2229_v54 }
 0x1bc   :  { %956 = vmatpush.bf16.msrb.mxu2 %v2231_v55  ;;  %969 = vmatpush.bf16.msrb.mxu3 %v2243_v59 }
 0x1bf   :  { %931 = vmatpush.bf16.msrb.mxu0 %v2261_v1  ;;  %944 = vmatpush.bf16.msrb.mxu1 %v2265_v2 }
 0x1c0   :  { %957 = vmatpush.bf16.msrb.mxu2 %v2267_v3  ;;  %970 = vmatpush.bf16.msrb.mxu3 %v2279_v7 }
 0x1c3   :  { %932 = vmatpush.bf16.msrb.mxu0 %v2297_v13  ;;  %945 = vmatpush.bf16.msrb.mxu1 %v2307_v16 }
 0x1c4   :  { %958 = vmatpush.bf16.msrb.mxu2 %v2309_v17  ;;  %971 = vmatpush.bf16.msrb.mxu3 %v2321_v21 }
 0x1c7   :  { %933 = vmatpush.bf16.msrb.mxu0 %v2336_v26  ;;  %946 = vmatpush.bf16.msrb.mxu1 %v2340_v27 }
 0x1c8   :  { %959 = vmatpush.bf16.msrb.mxu2 %v2342_v28  ;;  %972 = vmatpush.bf16.msrb.mxu3 %v2354_v32 }
 0x1cb   :  { %934 = vmatpush.bf16.msrb.mxu0 %v2372_v38  ;;  %947 = vmatpush.bf16.msrb.mxu1 %v2376_v39 }
 0x1cc   :  { %960 = vmatpush.bf16.msrb.mxu2 %v2378_v43  ;;  %973 = vmatpush.bf16.msrb.mxu3 %v2390_v48 }
 0x1cf   :  { %935 = vmatpush.bf16.msrb.mxu0 %v2408_v57  ;;  %948 = vmatpush.bf16.msrb.mxu1 %v2412_v58 }
 0x1d0   :  { %961 = vmatpush.bf16.msrb.mxu2 %v2414_v60  ;;  %974 = vmatpush.bf16.msrb.mxu3 %v2426_v0 }
 0x1d3   :  { %936 = vmatpush.bf16.msrb.mxu0 %v2444_v10  ;;  %949 = vmatpush.bf16.msrb.mxu1 %v2448_v12 }
 0x1d4   :  { %962 = vmatpush.bf16.msrb.mxu2 %v2450_v14  ;;  %975 = vmatpush.bf16.msrb.mxu3 %v2453_v15 }
 0x232   :  { %v722_v56 = vpop.f32.mrf.mxu0  ;;  %v735_v23 = vpop.f32.mrf.mxu1 }
 0x233   :  { %v769_v24 = vrot.slane %v735_v23, 7 }
 0x235   :  { %v772_v35 = vsel %vm553_vm0, %v722_v56, %v769_v24 }
 0x239   :  { %v748_v25 = vpop.f32.mrf.mxu2  ;;  %v761_v29 = vpop.f32.mrf.mxu3 }
 0x23a   :  { %v770_v30 = vrot.slane %v748_v25, 6  ;;  %v771_v31 = vrot.slane %v761_v29, 5  ;;  %v724_v33 = vpop.f32.mrf.mxu0  ;;  %v737_v34 = vpop.f32.mrf.mxu1 }
 0x23b   :  { %v1351_v34 = vperm.slane %v2578_v20, 0 }
 0x23c   :  { %v773_v36 = vsel %vm555_vm1, %v770_v30, %v771_v31 }
 0x23d   :  { %v774_v44 = vsel %vm557_vm2, %v772_v35, %v773_v36 }
 0x23e   :  { %v776_v45 = vadd.f32 %v774_v44, %v711_v37  ;;  %v1371_v44 = vsel %vm553_vm0, %v2535_v63, %v1351_v34 }
 0x240   :  { %v1712_v47 = vmul.f32 -1.442695, %v776_v45  ;;  %v797_v4 = vrot.slane %v776_v45, 3 }
 0x241   :  { %v750_v49 = vpop.f32.mrf.mxu2  ;;  %v763_v50 = vpop.f32.mrf.mxu3 }
 0x242   :  { %1801 = vpow2.f32 %v1712_v47 }
 0x248   :  { %v1802_v51 = vpop.eup %1801 }
 0x249   :  { %v780_v52 = vadd.f32 1.0, %v1802_v51 }
 0x24b   :  { %1803 = vrcp.f32 %v780_v52  ;;  %v792_v6 = vand.u32 2147483648, %v780_v52  ;;  %v790_v9 = vand.u32 2147483647, %v780_v52  ;;  %vm786_vm12 = vweird.f32 %v780_v52 }
 0x24c   :  { %1805 = vtanh.f32 %v797_v4 }
 0x24d   :  { %v793_v19 = vor.u32 1.1754944e-38, %v792_v6  ;;  %vm791_vm14 = vcmp.eq.f32.partialorder %v790_v9, 8.507059e+37 }
 0x251   :  { %v1804_v61 = vpop.eup %1803 }
 0x252   :  { %v782_v62 = vmul.f32 %v1804_v61, %v780_v52  ;;  %vm787_vm11 = vweird.f32 %v1804_v61  ;;  %v1806_v24 = vpop.eup %1805 }
 0x253   :  { %vm788_vm13 = vmor %vm786_vm12, %vm787_vm11  ;;  %vm1375_vm11 = vcmask 1043456  }
 0x254   :  { %v783_v5 = vsub.f32 1.0, %v782_v62 }
 0x256   :  { %v784_v8 = vmul.f32 %v1804_v61, %v783_v5  ;;  %v819_v5 = vld [vmem:[#allocation2 + $0x3] ss:$8 sm:$0xf] }
 0x258   :  { %v785_v18 = vadd.f32 %v1804_v61, %v784_v8 }
 0x25a   :  { %v789_v22 = vsel %vm788_vm13, %v1804_v61, %v785_v18 }
 0x25b   :  { %v794_v56 = vsel %vm791_vm14, %v793_v19, %v789_v22 }
 0x25c   :  { %v801_v23 = vrot.slane %v794_v56, 1  ;;  %v804_v29 = vmul.f32 %v1806_v24, %v794_v56  ;;  %v807_v31 = vrot.slane %v794_v56, 2 }
 0x25e   :  { %v803_v25 = vmul.f32 %v801_v23, %v2575_v11 }
 0x260   :  { %v2618_v30 = vadd.f32 %v804_v29, %v803_v25 }
 0x262   :  { %1807 = vtanh.f32 %v2618_v30 }
 0x268   :  { %v1808_v33 = vpop.eup %1807 }
 0x269   :  { %v809_v35 = vmul.f32 %v1808_v33, %v807_v31 }
 0x26b   :  { %v820_v36 = vpack.c.bf16 %v809_v35, %v809_v35  ;;  %v1354_v37 = vperm.slane %v809_v35, 0 }
 0x26d   :  { %829 = vmatmul.bf16.vlgmr.msra.gmra.mxu0 %v820_v36  ;;  %842 = vmatmul.bf16.vlgmr.msra.gmra.mxu1 %v820_v36  ;;  %v2625_v45 = vsel %vm557_vm2, %v1371_v44, %v1354_v37 }
 0x26e   :  { %855 = vmatmul.bf16.vlgmr.msra.gmra.mxu2 %v820_v36  ;;  %868 = vmatmul.bf16.vlgmr.msra.gmra.mxu3 %v820_v36 }
 0x26f   :  { %1037 = vmatpush.bf16.msra.mxu0 %v2189_v40  ;;  %1050 = vmatpush.bf16.msra.mxu1 %v2191_v41 }
 0x270   :  { %1063 = vmatpush.bf16.msra.mxu2 %v2193_v42  ;;  %1076 = vmatpush.bf16.msra.mxu3 %v2204_v46 }
 0x273   :  { %1038 = vmatpush.bf16.msra.mxu0 %v2225_v53  ;;  %1051 = vmatpush.bf16.msra.mxu1 %v2229_v54 }
 0x274   :  { %1064 = vmatpush.bf16.msra.mxu2 %v2231_v55  ;;  %1077 = vmatpush.bf16.msra.mxu3 %v2243_v59 }
 0x277   :  { %1039 = vmatpush.bf16.msra.mxu0 %v2261_v1  ;;  %1052 = vmatpush.bf16.msra.mxu1 %v2265_v2 }
 0x278   :  { %1065 = vmatpush.bf16.msra.mxu2 %v2267_v3  ;;  %1078 = vmatpush.bf16.msra.mxu3 %v2279_v7 }
 0x27b   :  { %1040 = vmatpush.bf16.msra.mxu0 %v2297_v13  ;;  %1053 = vmatpush.bf16.msra.mxu1 %v2307_v16 }
 0x27c   :  { %1066 = vmatpush.bf16.msra.mxu2 %v2309_v17  ;;  %1079 = vmatpush.bf16.msra.mxu3 %v2321_v21 }
 0x27f   :  { %1041 = vmatpush.bf16.msra.mxu0 %v2336_v26  ;;  %1054 = vmatpush.bf16.msra.mxu1 %v2340_v27 }
 0x280   :  { %1067 = vmatpush.bf16.msra.mxu2 %v2342_v28  ;;  %1080 = vmatpush.bf16.msra.mxu3 %v2354_v32 }
 0x283   :  { %1042 = vmatpush.bf16.msra.mxu0 %v2372_v38  ;;  %1055 = vmatpush.bf16.msra.mxu1 %v2376_v39 }
 0x284   :  { %1068 = vmatpush.bf16.msra.mxu2 %v2378_v43  ;;  %1081 = vmatpush.bf16.msra.mxu3 %v2390_v48 }
 0x287   :  { %1043 = vmatpush.bf16.msra.mxu0 %v2408_v57  ;;  %1056 = vmatpush.bf16.msra.mxu1 %v2412_v58 }
 0x288   :  { %1069 = vmatpush.bf16.msra.mxu2 %v2414_v60  ;;  %1082 = vmatpush.bf16.msra.mxu3 %v2426_v0 }
 0x28b   :  { %1044 = vmatpush.bf16.msra.mxu0 %v2444_v10  ;;  %1057 = vmatpush.bf16.msra.mxu1 %v2448_v12 }
 0x28c   :  { %1070 = vmatpush.bf16.msra.mxu2 %v2450_v14  ;;  %1083 = vmatpush.bf16.msra.mxu3 %v2453_v15 }
 0x2ea   :  { %v830_v63 = vpop.f32.mrf.mxu0  ;;  %v843_v11 = vpop.f32.mrf.mxu1 }
 0x2eb   :  { %v877_v20 = vrot.slane %v843_v11, 7 }
 0x2ed   :  { %v880_v62 = vsel %vm553_vm0, %v830_v63, %v877_v20 }
 0x2f1   :  { %v856_v47 = vpop.f32.mrf.mxu2  ;;  %v869_v49 = vpop.f32.mrf.mxu3 }
 0x2f2   :  { %v878_v50 = vrot.slane %v856_v47, 6  ;;  %v879_v51 = vrot.slane %v869_v49, 5  ;;  %v832_v52 = vpop.f32.mrf.mxu0  ;;  %v845_v61 = vpop.f32.mrf.mxu1 }
 0x2f4   :  { %v881_v4 = vsel %vm555_vm1, %v878_v50, %v879_v51 }
 0x2f5   :  { %v882_v6 = vsel %vm557_vm2, %v880_v62, %v881_v4 }
 0x2f6   :  { %v884_v8 = vadd.f32 %v882_v6, %v819_v5 }
 0x2f8   :  { %v1713_v9 = vmul.f32 -1.442695, %v884_v8  ;;  %v905_v25 = vrot.slane %v884_v8, 3 }
 0x2f9   :  { %v858_v18 = vpop.f32.mrf.mxu2  ;;  %v871_v19 = vpop.f32.mrf.mxu3 }
 0x2fa   :  { %1809 = vpow2.f32 %v1713_v9 }
 0x300   :  { %v1810_v22 = vpop.eup %1809 }
 0x301   :  { %v888_v56 = vadd.f32 1.0, %v1810_v22 }
 0x303   :  { %1811 = vrcp.f32 %v888_v56  ;;  %v900_v31 = vand.u32 2147483648, %v888_v56  ;;  %v898_v34 = vand.u32 2147483647, %v888_v56  ;;  %vm894_vm3 = vweird.f32 %v888_v56 }
 0x304   :  { %1813 = vtanh.f32 %v905_v25 }
 0x305   :  { %v901_v36 = vor.u32 1.1754944e-38, %v900_v31  ;;  %vm899_vm5 = vcmp.eq.f32.partialorder %v898_v34, 8.507059e+37 }
 0x309   :  { %v1812_v23 = vpop.eup %1811 }
 0x30a   :  { %v890_v24 = vmul.f32 %v1812_v23, %v888_v56  ;;  %vm895_vm15 = vweird.f32 %v1812_v23  ;;  %v1814_v11 = vpop.eup %1813 }
 0x30b   :  { %vm896_vm4 = vmor %vm894_vm3, %vm895_vm15  ;;  %vm1377_vm3 = vcmask 1044480  }
 0x30c   :  { %v891_v29 = vsub.f32 1.0, %v890_v24  ;;  %v927_v24 = vld [vmem:[#allocation2 + $0x4] ss:$8 sm:$0xf] }
 0x30e   :  { %v892_v33 = vmul.f32 %v1812_v23, %v891_v29 }
 0x310   :  { %v893_v35 = vadd.f32 %v1812_v23, %v892_v33 }
 0x312   :  { %v897_v37 = vsel %vm896_vm4, %v1812_v23, %v893_v35 }
 0x313   :  { %v902_v44 = vsel %vm899_vm5, %v901_v36, %v897_v37 }
 0x314   :  { %v909_v63 = vrot.slane %v902_v44, 1  ;;  %v912_v47 = vmul.f32 %v1814_v11, %v902_v44  ;;  %v915_v50 = vrot.slane %v902_v44, 2 }
 0x316   :  { %v911_v20 = vmul.f32 %v909_v63, %v2618_v30 }
 0x318   :  { %v2663_v49 = vadd.f32 %v912_v47, %v911_v20 }
 0x31a   :  { %1815 = vtanh.f32 %v2663_v49 }
 0x320   :  { %v1816_v51 = vpop.eup %1815 }
 0x321   :  { %v917_v52 = vmul.f32 %v1816_v51, %v915_v50 }
 0x323   :  { %v928_v61 = vpack.c.bf16 %v917_v52, %v917_v52  ;;  %v1357_v62 = vperm.slane %v917_v52, 0 }
 0x325   :  { %937 = vmatmul.bf16.vlgmr.msrb.gmra.mxu0 %v928_v61  ;;  %950 = vmatmul.bf16.vlgmr.msrb.gmra.mxu1 %v928_v61  ;;  %v2667_v4 = vsel %vm1373_vm6, %v2625_v45, %v1357_v62 }
 0x326   :  { %963 = vmatmul.bf16.vlgmr.msrb.gmra.mxu2 %v928_v61  ;;  %976 = vmatmul.bf16.vlgmr.msrb.gmra.mxu3 %v928_v61 }
 0x327   :  { %1145 = vmatpush.bf16.msrb.mxu0 %v2189_v40  ;;  %1158 = vmatpush.bf16.msrb.mxu1 %v2191_v41 }
 0x328   :  { %1171 = vmatpush.bf16.msrb.mxu2 %v2193_v42  ;;  %1184 = vmatpush.bf16.msrb.mxu3 %v2204_v46 }
 0x32b   :  { %1146 = vmatpush.bf16.msrb.mxu0 %v2225_v53  ;;  %1159 = vmatpush.bf16.msrb.mxu1 %v2229_v54 }
 0x32c   :  { %1172 = vmatpush.bf16.msrb.mxu2 %v2231_v55  ;;  %1185 = vmatpush.bf16.msrb.mxu3 %v2243_v59 }
 0x32f   :  { %1147 = vmatpush.bf16.msrb.mxu0 %v2261_v1  ;;  %1160 = vmatpush.bf16.msrb.mxu1 %v2265_v2 }
 0x330   :  { %1173 = vmatpush.bf16.msrb.mxu2 %v2267_v3  ;;  %1186 = vmatpush.bf16.msrb.mxu3 %v2279_v7 }
 0x333   :  { %1148 = vmatpush.bf16.msrb.mxu0 %v2297_v13  ;;  %1161 = vmatpush.bf16.msrb.mxu1 %v2307_v16 }
 0x334   :  { %1174 = vmatpush.bf16.msrb.mxu2 %v2309_v17  ;;  %1187 = vmatpush.bf16.msrb.mxu3 %v2321_v21 }
 0x337   :  { %1149 = vmatpush.bf16.msrb.mxu0 %v2336_v26  ;;  %1162 = vmatpush.bf16.msrb.mxu1 %v2340_v27 }
 0x338   :  { %1175 = vmatpush.bf16.msrb.mxu2 %v2342_v28  ;;  %1188 = vmatpush.bf16.msrb.mxu3 %v2354_v32 }
 0x33b   :  { %1150 = vmatpush.bf16.msrb.mxu0 %v2372_v38  ;;  %1163 = vmatpush.bf16.msrb.mxu1 %v2376_v39 }
 0x33c   :  { %1176 = vmatpush.bf16.msrb.mxu2 %v2378_v43  ;;  %1189 = vmatpush.bf16.msrb.mxu3 %v2390_v48 }
 0x33f   :  { %1151 = vmatpush.bf16.msrb.mxu0 %v2408_v57  ;;  %1164 = vmatpush.bf16.msrb.mxu1 %v2412_v58 }
 0x340   :  { %1177 = vmatpush.bf16.msrb.mxu2 %v2414_v60  ;;  %1190 = vmatpush.bf16.msrb.mxu3 %v2426_v0 }
 0x343   :  { %1152 = vmatpush.bf16.msrb.mxu0 %v2444_v10  ;;  %1165 = vmatpush.bf16.msrb.mxu1 %v2448_v12 }
 0x344   :  { %1178 = vmatpush.bf16.msrb.mxu2 %v2450_v14  ;;  %1191 = vmatpush.bf16.msrb.mxu3 %v2453_v15 }
 0x3a2   :  { %v938_v30 = vpop.f32.mrf.mxu0  ;;  %v951_v45 = vpop.f32.mrf.mxu1 }
 0x3a3   :  { %v985_v5 = vrot.slane %v951_v45, 7 }
 0x3a5   :  { %v988_v56 = vsel %vm553_vm0, %v938_v30, %v985_v5 }
 0x3a9   :  { %v964_v6 = vpop.f32.mrf.mxu2  ;;  %v977_v8 = vpop.f32.mrf.mxu3 }
 0x3aa   :  { %v986_v9 = vrot.slane %v964_v6, 6  ;;  %v987_v18 = vrot.slane %v977_v8, 5  ;;  %v940_v19 = vpop.f32.mrf.mxu0  ;;  %v953_v22 = vpop.f32.mrf.mxu1 }
 0x3ac   :  { %v989_v23 = vsel %vm555_vm1, %v986_v9, %v987_v18 }
 0x3ad   :  { %v990_v25 = vsel %vm557_vm2, %v988_v56, %v989_v23 }
 0x3ae   :  { %v992_v29 = vadd.f32 %v990_v25, %v927_v24 }
 0x3b0   :  { %v1714_v31 = vmul.f32 -1.442695, %v992_v29  ;;  %v1013_v63 = vrot.slane %v992_v29, 3 }
 0x3b1   :  { %v966_v33 = vpop.f32.mrf.mxu2  ;;  %v979_v34 = vpop.f32.mrf.mxu3 }
 0x3b2   :  { %1817 = vpow2.f32 %v1714_v31 }
 0x3b8   :  { %v1818_v35 = vpop.eup %1817 }
 0x3b9   :  { %v996_v36 = vadd.f32 1.0, %v1818_v35 }
 0x3bb   :  { %1819 = vrcp.f32 %v996_v36  ;;  %v1008_v20 = vand.u32 2147483648, %v996_v36  ;;  %v1006_v50 = vand.u32 2147483647, %v996_v36  ;;  %vm1002_vm8 = vweird.f32 %v996_v36 }
 0x3bc   :  { %1821 = vtanh.f32 %v1013_v63 }
 0x3bd   :  { %v1009_v52 = vor.u32 1.1754944e-38, %v1008_v20  ;;  %vm1007_vm10 = vcmp.eq.f32.partialorder %v1006_v50, 8.507059e+37 }
 0x3c1   :  { %v1820_v37 = vpop.eup %1819 }
 0x3c2   :  { %v998_v44 = vmul.f32 %v1820_v37, %v996_v36  ;;  %vm1003_vm7 = vweird.f32 %v1820_v37  ;;  %v1822_v45 = vpop.eup %1821 }
 0x3c3   :  { %vm1004_vm9 = vmor %vm1002_vm8, %vm1003_vm7  ;;  %vm1379_vm8 = vcmask 1045504  }
 0x3c4   :  { %v999_v11 = vsub.f32 1.0, %v998_v44 }
 0x3c6   :  { %v1000_v47 = vmul.f32 %v1820_v37, %v999_v11 }
 0x3c8   :  { %v1001_v51 = vadd.f32 %v1820_v37, %v1000_v47 }
 0x3ca   :  { %v1005_v61 = vsel %vm1004_vm9, %v1820_v37, %v1001_v51 }
 0x3cb   :  { %v1010_v62 = vsel %vm1007_vm10, %v1009_v52, %v1005_v61  ;;  %vm1381_vm10 = vcmask 1046528  }
 0x3cc   :  { %v1017_v30 = vrot.slane %v1010_v62, 1  ;;  %v1020_v6 = vmul.f32 %v1822_v45, %v1010_v62  ;;  %v1023_v9 = vrot.slane %v1010_v62, 2  ;;  %v1143_v62 = vld [vmem:[#allocation2 + $0x6] ss:$8 sm:$0xf] }
 0x3ce   :  { %v1019_v5 = vmul.f32 %v1017_v30, %v2663_v49 }
 0x3d0   :  { %v2705_v8 = vadd.f32 %v1020_v6, %v1019_v5 }
 0x3d2   :  { %1823 = vtanh.f32 %v2705_v8 }
 0x3d8   :  { %v1824_v18 = vpop.eup %1823 }
 0x3d9   :  { %v1025_v19 = vmul.f32 %v1824_v18, %v1023_v9 }
 0x3db   :  { %v1036_v22 = vpack.c.bf16 %v1025_v19, %v1025_v19  ;;  %v1360_v56 = vperm.slane %v1025_v19, 0 }
 0x3dd   :  { %1045 = vmatmul.bf16.vlgmr.msra.gmra.mxu0 %v1036_v22  ;;  %1058 = vmatmul.bf16.vlgmr.msra.gmra.mxu1 %v1036_v22  ;;  %v2709_v23 = vsel %vm1375_vm11, %v2667_v4, %v1360_v56 }
 0x3de   :  { %1071 = vmatmul.bf16.vlgmr.msra.gmra.mxu2 %v1036_v22  ;;  %1084 = vmatmul.bf16.vlgmr.msra.gmra.mxu3 %v1036_v22 }
 0x3df   :  { %1253 = vmatpush.bf16.msra.mxu0 %v2189_v40  ;;  %1266 = vmatpush.bf16.msra.mxu1 %v2191_v41 }
 0x3e0   :  { %1279 = vmatpush.bf16.msra.mxu2 %v2193_v42  ;;  %1292 = vmatpush.bf16.msra.mxu3 %v2204_v46 }
 0x3e3   :  { %1254 = vmatpush.bf16.msra.mxu0 %v2225_v53  ;;  %1267 = vmatpush.bf16.msra.mxu1 %v2229_v54 }
 0x3e4   :  { %1280 = vmatpush.bf16.msra.mxu2 %v2231_v55  ;;  %1293 = vmatpush.bf16.msra.mxu3 %v2243_v59 }
 0x3e7   :  { %1255 = vmatpush.bf16.msra.mxu0 %v2261_v1  ;;  %1268 = vmatpush.bf16.msra.mxu1 %v2265_v2 }
 0x3e8   :  { %1281 = vmatpush.bf16.msra.mxu2 %v2267_v3  ;;  %1294 = vmatpush.bf16.msra.mxu3 %v2279_v7  ;;  %v1035_v7 = vld [vmem:[#allocation2 + $0x5] ss:$8 sm:$0xf] }
 0x3eb   :  { %1256 = vmatpush.bf16.msra.mxu0 %v2297_v13  ;;  %1269 = vmatpush.bf16.msra.mxu1 %v2307_v16 }
 0x3ec   :  { %1282 = vmatpush.bf16.msra.mxu2 %v2309_v17  ;;  %1295 = vmatpush.bf16.msra.mxu3 %v2321_v21 }
 0x3ef   :  { %1257 = vmatpush.bf16.msra.mxu0 %v2336_v26  ;;  %1270 = vmatpush.bf16.msra.mxu1 %v2340_v27 }
 0x3f0   :  { %1283 = vmatpush.bf16.msra.mxu2 %v2342_v28  ;;  %1296 = vmatpush.bf16.msra.mxu3 %v2354_v32 }
 0x3f3   :  { %1258 = vmatpush.bf16.msra.mxu0 %v2372_v38  ;;  %1271 = vmatpush.bf16.msra.mxu1 %v2376_v39 }
 0x3f4   :  { %1284 = vmatpush.bf16.msra.mxu2 %v2378_v43  ;;  %1297 = vmatpush.bf16.msra.mxu3 %v2390_v48 }
 0x3f7   :  { %1259 = vmatpush.bf16.msra.mxu0 %v2408_v57  ;;  %1272 = vmatpush.bf16.msra.mxu1 %v2412_v58 }
 0x3f8   :  { %1285 = vmatpush.bf16.msra.mxu2 %v2414_v60  ;;  %1298 = vmatpush.bf16.msra.mxu3 %v2426_v0 }
 0x3fb   :  { %1260 = vmatpush.bf16.msra.mxu0 %v2444_v10  ;;  %1273 = vmatpush.bf16.msra.mxu1 %v2448_v12 }
 0x3fc   :  { %1286 = vmatpush.bf16.msra.mxu2 %v2450_v14  ;;  %1299 = vmatpush.bf16.msra.mxu3 %v2453_v15 }
 0x45a   :  { %v1046_v40 = vpop.f32.mrf.mxu0  ;;  %v1059_v41 = vpop.f32.mrf.mxu1 }
 0x45b   :  { %v1093_v42 = vrot.slane %v1059_v41, 7 }
 0x45d   :  { %v1096_v2 = vsel %vm553_vm0, %v1046_v40, %v1093_v42 }
 0x461   :  { %v1072_v46 = vpop.f32.mrf.mxu2  ;;  %v1085_v53 = vpop.f32.mrf.mxu3 }
 0x462   :  { %v1094_v54 = vrot.slane %v1072_v46, 6  ;;  %v1095_v55 = vrot.slane %v1085_v53, 5  ;;  %v1048_v59 = vpop.f32.mrf.mxu0  ;;  %v1061_v1 = vpop.f32.mrf.mxu1 }
 0x464   :  { %v1097_v3 = vsel %vm555_vm1, %v1094_v54, %v1095_v55 }
 0x465   :  { %v1098_v13 = vsel %vm557_vm2, %v1096_v2, %v1097_v3 }
 0x466   :  { %v1100_v16 = vadd.f32 %v1098_v13, %v1035_v7 }
 0x468   :  { %v1715_v17 = vmul.f32 -1.442695, %v1100_v16  ;;  %v1121_v39 = vrot.slane %v1100_v16, 3 }
 0x469   :  { %v1074_v21 = vpop.f32.mrf.mxu2  ;;  %v1087_v26 = vpop.f32.mrf.mxu3 }
 0x46a   :  { %1825 = vpow2.f32 %v1715_v17 }
 0x470   :  { %v1826_v27 = vpop.eup %1825 }
 0x471   :  { %v1104_v28 = vadd.f32 1.0, %v1826_v27 }
 0x473   :  { %1827 = vrcp.f32 %v1104_v28  ;;  %v1116_v48 = vand.u32 2147483648, %v1104_v28  ;;  %v1114_v58 = vand.u32 2147483647, %v1104_v28  ;;  %vm1110_vm13 = vweird.f32 %v1104_v28 }
 0x474   :  { %1829 = vtanh.f32 %v1121_v39 }
 0x475   :  { %v1117_v0 = vor.u32 1.1754944e-38, %v1116_v48  ;;  %vm1115_vm15 = vcmp.eq.f32.partialorder %v1114_v58, 8.507059e+37 }
 0x479   :  { %v1828_v32 = vpop.eup %1827 }
 0x47a   :  { %v1106_v38 = vmul.f32 %v1828_v32, %v1104_v28  ;;  %vm1111_vm12 = vweird.f32 %v1828_v32  ;;  %v1830_v15 = vpop.eup %1829 }
 0x47b   :  { %vm1112_vm14 = vmor %vm1110_vm13, %vm1111_vm12 }
 0x47c   :  { %v1107_v43 = vsub.f32 1.0, %v1106_v38 }
 0x47e   :  { %v1108_v57 = vmul.f32 %v1828_v32, %v1107_v43 }
 0x480   :  { %v1109_v60 = vadd.f32 %v1828_v32, %v1108_v57 }
 0x482   :  { %v1113_v10 = vsel %vm1112_vm14, %v1828_v32, %v1109_v60 }
 0x483   :  { %v1118_v12 = vsel %vm1115_vm15, %v1117_v0, %v1113_v10 }
 0x484   :  { %v1125_v14 = vrot.slane %v1118_v12, 1  ;;  %v1128_v4 = vmul.f32 %v1830_v15, %v1118_v12  ;;  %v1131_v25 = vrot.slane %v1118_v12, 2  ;;  %v1251_v12 = vld [vmem:[#allocation2 + $0x7] ss:$8 sm:$0xf] }
 0x486   :  { %v1127_v49 = vmul.f32 %v1125_v14, %v2705_v8 }
 0x488   :  { %v1129_v24 = vadd.f32 %v1128_v4, %v1127_v49 }
 0x48a   :  { %1831 = vtanh.f32 %v1129_v24 }
 0x490   :  { %v1832_v29 = vpop.eup %1831 }
 0x491   :  { %v1133_v31 = vmul.f32 %v1832_v29, %v1131_v25 }
 0x493   :  { %v1144_v33 = vpack.c.bf16 %v1133_v31, %v1133_v31  ;;  %v1363_v34 = vperm.slane %v1133_v31, 0 }
 0x495   :  { %1153 = vmatmul.bf16.vlgmr.msrb.gmra.mxu0 %v1144_v33  ;;  %1166 = vmatmul.bf16.vlgmr.msrb.gmra.mxu1 %v1144_v33  ;;  %v1378_v35 = vsel %vm1377_vm3, %v2709_v23, %v1363_v34 }
 0x496   :  { %1179 = vmatmul.bf16.vlgmr.msrb.gmra.mxu2 %v1144_v33  ;;  %1192 = vmatmul.bf16.vlgmr.msrb.gmra.mxu3 %v1144_v33 }
 0x512   :  { %v1154_v36 = vpop.f32.mrf.mxu0  ;;  %v1167_v37 = vpop.f32.mrf.mxu1 }
 0x513   :  { %v1201_v44 = vrot.slane %v1167_v37, 7 }
 0x515   :  { %v1204_v52 = vsel %vm553_vm0, %v1154_v36, %v1201_v44 }
 0x519   :  { %v1180_v63 = vpop.f32.mrf.mxu2  ;;  %v1193_v11 = vpop.f32.mrf.mxu3 }
 0x51a   :  { %v1202_v20 = vrot.slane %v1180_v63, 6  ;;  %v1203_v47 = vrot.slane %v1193_v11, 5  ;;  %v1156_v50 = vpop.f32.mrf.mxu0  ;;  %v1169_v51 = vpop.f32.mrf.mxu1 }
 0x51c   :  { %v1205_v61 = vsel %vm555_vm1, %v1202_v20, %v1203_v47 }
 0x51d   :  { %v1206_v30 = vsel %vm557_vm2, %v1204_v52, %v1205_v61 }
 0x51e   :  { %v1208_v45 = vadd.f32 %v1206_v30, %v1143_v62 }
 0x520   :  { %v1716_v5 = vmul.f32 -1.442695, %v1208_v45  ;;  %v1229_v56 = vrot.slane %v1208_v45, 3 }
 0x521   :  { %v1182_v6 = vpop.f32.mrf.mxu2  ;;  %v1195_v8 = vpop.f32.mrf.mxu3 }
 0x522   :  { %1833 = vpow2.f32 %v1716_v5 }
 0x528   :  { %v1834_v9 = vpop.eup %1833 }
 0x529   :  { %v1212_v18 = vadd.f32 1.0, %v1834_v9 }
 0x52b   :  { %1835 = vrcp.f32 %v1212_v18  ;;  %v1224_v40 = vand.u32 2147483648, %v1212_v18  ;;  %v1222_v42 = vand.u32 2147483647, %v1212_v18  ;;  %vm1218_vm5 = vweird.f32 %v1212_v18 }
 0x52c   :  { %1837 = vtanh.f32 %v1229_v56 }
 0x52d   :  { %v1225_v53 = vor.u32 1.1754944e-38, %v1224_v40  ;;  %vm1223_vm7 = vcmp.eq.f32.partialorder %v1222_v42, 8.507059e+37 }
 0x531   :  { %v1836_v19 = vpop.eup %1835 }
 0x532   :  { %v1214_v22 = vmul.f32 %v1836_v19, %v1212_v18  ;;  %vm1219_vm4 = vweird.f32 %v1836_v19  ;;  %v1838_v1 = vpop.eup %1837 }
 0x533   :  { %vm1220_vm6 = vmor %vm1218_vm5, %vm1219_vm4 }
 0x534   :  { %v1215_v23 = vsub.f32 1.0, %v1214_v22 }
 0x536   :  { %v1216_v41 = vmul.f32 %v1836_v19, %v1215_v23 }
 0x538   :  { %v1217_v46 = vadd.f32 %v1836_v19, %v1216_v41 }
 0x53a   :  { %v1221_v54 = vsel %vm1220_vm6, %v1836_v19, %v1217_v46 }
 0x53b   :  { %v1226_v55 = vsel %vm1223_vm7, %v1225_v53, %v1221_v54 }
 0x53c   :  { %v1233_v59 = vrot.slane %v1226_v55, 1  ;;  %v1236_v3 = vmul.f32 %v1838_v1, %v1226_v55  ;;  %v1239_v13 = vrot.slane %v1226_v55, 2 }
 0x53e   :  { %v1235_v2 = vmul.f32 %v1233_v59, %v1129_v24 }
 0x540   :  { %v1237_v7 = vadd.f32 %v1236_v3, %v1235_v2 }
 0x542   :  { %1839 = vtanh.f32 %v1237_v7 }
 0x548   :  { %v1840_v16 = vpop.eup %1839 }
 0x549   :  { %v1241_v17 = vmul.f32 %v1840_v16, %v1239_v13 }
 0x54b   :  { %v1252_v21 = vpack.c.bf16 %v1241_v17, %v1241_v17  ;;  %v1366_v26 = vperm.slane %v1241_v17, 0 }
 0x54d   :  { %1261 = vmatmul.bf16.vlgmr.msra.gmra.mxu0 %v1252_v21  ;;  %1274 = vmatmul.bf16.vlgmr.msra.gmra.mxu1 %v1252_v21  ;;  %v2751_v27 = vsel %vm1379_vm8, %v1378_v35, %v1366_v26 }
 0x54e   :  { %1287 = vmatmul.bf16.vlgmr.msra.gmra.mxu2 %v1252_v21  ;;  %1300 = vmatmul.bf16.vlgmr.msra.gmra.mxu3 %v1252_v21 }
 0x5ca   :  { %v1262_v28 = vpop.f32.mrf.mxu0  ;;  %v1275_v32 = vpop.f32.mrf.mxu1 }
 0x5cb   :  { %v1309_v38 = vrot.slane %v1275_v32, 7 }
 0x5cd   :  { %v1312_v0 = vsel %vm553_vm0, %v1262_v28, %v1309_v38 }
 0x5d1   :  { %v1288_v39 = vpop.f32.mrf.mxu2  ;;  %v1301_v43 = vpop.f32.mrf.mxu3 }
 0x5d2   :  { %v1310_v48 = vrot.slane %v1288_v39, 6  ;;  %v1311_v57 = vrot.slane %v1301_v43, 5  ;;  %v1264_v58 = vpop.f32.mrf.mxu0  ;;  %v1277_v60 = vpop.f32.mrf.mxu1 }
 0x5d4   :  { %v1313_v10 = vsel %vm555_vm1, %v1310_v48, %v1311_v57 }
 0x5d5   :  { %v1314_v14 = vsel %vm557_vm2, %v1312_v0, %v1313_v10 }
 0x5d6   :  { %v1316_v15 = vadd.f32 %v1314_v14, %v1251_v12 }
 0x5d8   :  { %v1717_v49 = vmul.f32 -1.442695, %v1316_v15  ;;  %v1337_v34 = vrot.slane %v1316_v15, 3 }
 0x5d9   :  { %v1290_v4 = vpop.f32.mrf.mxu2  ;;  %v1303_v24 = vpop.f32.mrf.mxu3 }
 0x5da   :  { %1841 = vpow2.f32 %v1717_v49 }
 0x5e0   :  { %v1842_v25 = vpop.eup %1841 }
 0x5e1   :  { %v1320_v29 = vadd.f32 1.0, %v1842_v25 }
 0x5e3   :  { %1843 = vrcp.f32 %v1320_v29  ;;  %v1332_v36 = vand.u32 2147483648, %v1320_v29  ;;  %v1330_v44 = vand.u32 2147483647, %v1320_v29  ;;  %vm1326_vm1 = vweird.f32 %v1320_v29 }
 0x5e4   :  { %1845 = vtanh.f32 %v1337_v34 }
 0x5e5   :  { %v1333_v11 = vor.u32 1.1754944e-38, %v1332_v36  ;;  %vm1331_vm9 = vcmp.eq.f32.partialorder %v1330_v44, 8.507059e+37 }
 0x5e9   :  { %v1844_v31 = vpop.eup %1843 }
 0x5ea   :  { %v1322_v33 = vmul.f32 %v1844_v31, %v1320_v29  ;;  %vm1327_vm0 = vweird.f32 %v1844_v31  ;;  %v1846_v51 = vpop.eup %1845 }
 0x5eb   :  { %vm1328_vm2 = vmor %vm1326_vm1, %vm1327_vm0 }
 0x5ec   :  { %v1323_v35 = vsub.f32 1.0, %v1322_v33 }
 0x5ee   :  { %v1324_v37 = vmul.f32 %v1844_v31, %v1323_v35 }
 0x5f0   :  { %v1325_v63 = vadd.f32 %v1844_v31, %v1324_v37 }
 0x5f2   :  { %v1329_v20 = vsel %vm1328_vm2, %v1844_v31, %v1325_v63 }
 0x5f3   :  { %v1334_v47 = vsel %vm1331_vm9, %v1333_v11, %v1329_v20 }
 0x5f4   :  { %v1341_v50 = vrot.slane %v1334_v47, 1  ;;  %v1344_v61 = vmul.f32 %v1846_v51, %v1334_v47  ;;  %v1347_v30 = vrot.slane %v1334_v47, 2 }
 0x5f6   :  { %v1343_v52 = vmul.f32 %v1341_v50, %v1237_v7 }
 0x5f8   :  { %v1345_v62 = vadd.f32 %v1344_v61, %v1343_v52 }
 0x5fa   :  { %1847 = vtanh.f32 %v1345_v62  ;;  %1385 = vst [vmem:[#allocation7] sm:$0x1] %v1345_v62 }
 0x600   :  { %v1848_v45 = vpop.eup %1847 }
 0x601   :  { %v1349_v5 = vmul.f32 %v1848_v45, %v1347_v30 }
 0x603   :  { %1384 = vst [vmem:[#allocation5] sm:$0x1] %v1349_v5  ;;  %v1369_v6 = vperm.slane %v1349_v5, 0 }
 0x604   :  { %1407 = dma.vmem_to_hbm [thread:$0]  %s1403_s4, 16, %s1405_s0, [#allocation6]  }
 0x605   :  { %v1382_v8 = vsel %vm1381_vm10, %v2751_v27, %v1369_v6  ;;  %1418 = dma.vmem_to_hbm [thread:$0]  %s1414_s16, 16, %s1416_s19, [#allocation6]  }
 0x606   :  { %1383 = vst [vmem:[#allocation3] sm:$0xff] %v1382_v8 }
 0x607   :  { %1396 = dma.vmem_to_hbm [thread:$0]  %s1392_s21, 128, %s1394_s24, [#allocation4]  }
 0x608   :  { %1921 = dma.done.wait [#allocation4], 128  }
 0x609   :  { %1922 = vsyncadd [#allocation4], 4294967168 }
 0x60a   :  { %1923 = dma.done.wait [#allocation6], 32  }
 0x60b   :  { %1924 = vsyncadd [#allocation6], 4294967264 }
 0x60c   :  { %1431 = vsyncpa [#allocation4], 1 }
 0x60d   :  { %1432 = vsyncpa [#allocation6], 1 }

</bundles_post_ra>
